<compile_context>
chip_gen: v6e
topology: v6e:2x2x1
jax: 0.10.0
libtpu: 0.0.40
codegen_flags: <defaults>
</compile_context>

<pallas_src>
import jax
import jax.numpy as jnp
from jax.experimental import pallas as pl
from jax.experimental.pallas import tpu as pltpu


def _tensorcores_per_chip():
    """v7x has 2 TensorCores per chip; v5e/v6e (and older) have 1."""
    try:
        kind = jax.devices()[0].device_kind.lower()
    except Exception:
        return 1
    return 2 if ("v7" in kind or "tpu7" in kind) else 1


def make_attention_kernel(num_heads, head_dim, scale, seq_len, batch_block):
    nh, hd, N, BB = num_heads, head_dim, seq_len, batch_block
    C = nh * hd

    def kernel(x_ref, wqkv_ref, bqkv_ref, add_ref, wproj_ref, bproj_ref, out_ref):
        # x_ref: (BB*N, C) -- token rows for BB batch elements.
        x = x_ref[...].astype(jnp.float32)

        # One wide QKV matmul for all BB*N tokens (best MXU row occupancy).
        qkv = jnp.dot(x, wqkv_ref[...],
                      preferred_element_type=jnp.float32) + bqkv_ref[...]   # (BB*N, 3C)

        # Head- (and batch-) stacked q/k/v: (BB*nh, N, hd).
        q_parts, k_parts, v_parts = [], [], []
        for b in range(BB):
            r = b * N
            for h in range(nh):
                c = h * hd
                q_parts.append(qkv[r:r + N, c:c + hd])
                k_parts.append(qkv[r:r + N, C + c:C + c + hd])
                v_parts.append(qkv[r:r + N, 2 * C + c:2 * C + c + hd])
        q = jnp.stack(q_parts, axis=0) * scale      # (BB*nh, N, hd)
        k = jnp.stack(k_parts, axis=0)
        v = jnp.stack(v_parts, axis=0)

        # Scores + (rpe bias + additive key mask), batched over (batch, head).
        s = jnp.einsum('bqd,bkd->bqk', q, k,
                       preferred_element_type=jnp.float32)                  # (BB*nh, N, N)
        s = s + add_ref[...]                        # single fused add (bias + mask)

        # Softmax over keys; reciprocal runs on the EUP, off the VALU path.
        s_max = jnp.max(s, axis=-1, keepdims=True)
        p = jnp.exp(s - s_max)
        denom = jnp.sum(p, axis=-1, keepdims=True)
        p = p * pl.reciprocal(denom, approx=False)

        o = jnp.einsum('bqk,bkd->bqd', p, v,
                       preferred_element_type=jnp.float32)                  # (BB*nh, N, hd)

        # Output projection without re-concatenating heads:
        #   y_b = sum_h o[b, h] @ wproj[h*hd:(h+1)*hd, :] + bproj
        for b in range(BB):
            ob = o[b * nh:(b + 1) * nh]                                     # (nh, N, hd)
            yb = jnp.einsum('hnd,hdc->hnc', ob, wproj_ref[...],
                            preferred_element_type=jnp.float32)             # (nh, N, C)
            yb = jnp.sum(yb, axis=0) + bproj_ref[...]                       # (N, C)
            out_ref[pl.ds(b * N, N), :] = yb.astype(out_ref.dtype)

    return kernel


def attention_pallas(x, wqkv, bqkv, rpe_table, rpe_index, mask,
                     wproj, bproj, num_heads, scale):
    B, N, C = x.shape
    hd = C // num_heads

    # --- glue (plain JAX, one-off): rpe gather + fold key mask additively ---
    bias = rpe_table[rpe_index].reshape(N, N, num_heads)
    bias = jnp.transpose(bias, (2, 0, 1)).astype(jnp.float32)               # (nh, N, N)
    mask_add = (mask.astype(jnp.float32) - 1.0) * 1e30                      # 0 keep, -1e30 masked
    add = bias[None, :, :, :] + mask_add[:, None, None, :]                  # (B, nh, N, N)
    add = add.reshape(B * num_heads, N, N)

    x2d = x.reshape(B * N, C)
    wqkv_f = wqkv.astype(jnp.float32)                                       # (C, 3C)
    bqkv2 = bqkv.reshape(1, 3 * C).astype(jnp.float32)
    wproj_h = wproj.astype(jnp.float32).reshape(num_heads, hd, C)           # head-split proj weight
    bproj2 = bproj.reshape(1, C).astype(jnp.float32)

    # v7x (2 TCs): keep a parallel batch grid so both cores get a batch element.
    # v5e/v6e (1 TC): merge the whole batch into one wide step (per-step grid
    # overhead dominates at these tiny shapes).
    BB = 1 if (_tensorcores_per_chip() >= 2 and B > 1) else B
    grid = (B // BB,)

    kernel = make_attention_kernel(num_heads, hd, scale, N, BB)

    def build(single_buffer_consts):
        def const_spec(shape):
            n = len(shape)

            def idx(i):
                return (0,) * n

            if single_buffer_consts:
                return pl.BlockSpec(shape, idx, pipeline_mode=pl.Buffered(1))
            return pl.BlockSpec(shape, idx)

        return pl.pallas_call(
            kernel,
            out_shape=jax.ShapeDtypeStruct((B * N, C), x.dtype),
            grid=grid,
            in_specs=[
                pl.BlockSpec((BB * N, C), lambda i: (i, 0)),                # x rows
                const_spec((C, 3 * C)),                                     # qkv weight
                const_spec((1, 3 * C)),                                     # qkv bias
                pl.BlockSpec((BB * num_heads, N, N), lambda i: (i, 0, 0)),  # rpe bias + mask
                const_spec((num_heads, hd, C)),                             # proj weight (head-split)
                const_spec((1, C)),                                         # proj bias
            ],
            out_specs=pl.BlockSpec((BB * N, C), lambda i: (i, 0)),
            compiler_params=pltpu.CompilerParams(
                dimension_semantics=("parallel",)),
        )

    args = (x2d, wqkv_f, bqkv2, add, wproj_h, bproj2)
    try:
        y2d = build(True)(*args)
    except Exception:
        # pl.Buffered(1) unsupported on this jax/Mosaic version -> default buffering.
        y2d = build(False)(*args)
    return y2d.reshape(B, N, C)


def attention_ref(x, wqkv, bqkv, rpe_table, rpe_index, mask,
                  wproj, bproj, num_heads, scale):
    """Plain-JAX mirror of the PyTorch forward, for correctness checking."""
    B, N, C = x.shape
    hd = C // num_heads
    qkv = x @ wqkv + bqkv
    qkv = qkv.reshape(B, N, 3, num_heads, hd).transpose(2, 0, 3, 1, 4)
    q, k, v = qkv[0], qkv[1], qkv[2]
    q = q * scale
    attn = q @ jnp.swapaxes(k, -2, -1)                                      # (B, nh, N, N)
    bias = rpe_table[rpe_index].reshape(N, N, num_heads).transpose(2, 0, 1)
    attn = attn + bias[None]
    attn = jnp.where(mask[:, None, None, :].astype(bool), attn, -jnp.inf)
    attn = jnp.clip(attn.astype(jnp.float32),
                    jnp.finfo(jnp.float32).min, jnp.finfo(jnp.float32).max)
    attn = jax.nn.softmax(attn, axis=-1)
    out = jnp.swapaxes(attn @ v, 1, 2).reshape(B, N, C)
    return out @ wproj + bproj


if __name__ == "__main__":
    # Module config: input_size=4 -> N=16 tokens, dim=32, num_heads=4
    B = 2
    input_size = 4
    N = input_size * input_size
    C = 32
    num_heads = 4
    head_dim = C // num_heads
    scale = head_dim ** (-0.5)
    table_size = (2 * input_size - 1) * (2 * input_size - 1)  # 49

    key = jax.random.PRNGKey(0)
    k_x, k_wq, k_bq, k_tab, k_idx, k_wp, k_bp, k_mask = jax.random.split(key, 8)

    x = jax.random.normal(k_x, (B, N, C), dtype=jnp.float32)

    # nn.Linear(dim, 3*dim): y = x @ W^T + b. We store W^T directly as (C, 3C).
    wqkv = jax.random.normal(k_wq, (C, 3 * C), dtype=jnp.float32) * 0.05
    bqkv = jax.random.normal(k_bq, (3 * C,), dtype=jnp.float32) * 0.05
    wproj = jax.random.normal(k_wp, (C, C), dtype=jnp.float32) * 0.05
    bproj = jax.random.normal(k_bp, (C,), dtype=jnp.float32) * 0.05

    # relative_position_bias_table is zero-init in PyTorch; use small random
    # values here so the rpe path actually affects the output.
    rpe_table = jax.random.normal(k_tab, (table_size, num_heads), dtype=jnp.float32) * 0.1
    rpe_index = jax.random.randint(k_idx, (N * N,), 0, table_size, dtype=jnp.int32)

    # key mask: mostly valid, zero out a couple of key positions per batch
    mask = jnp.ones((B, N), dtype=jnp.float32)
    mask = mask.at[0, N - 1].set(0.0).at[1, 0].set(0.0)

    out = attention_pallas(x, wqkv, bqkv, rpe_table, rpe_index, mask,
                           wproj, bproj, num_heads, scale)
    out = jax.block_until_ready(out)

    ref = attention_ref(x, wqkv, bqkv, rpe_table, rpe_index, mask,
                        wproj, bproj, num_heads, scale)
    ref = jax.block_until_ready(ref)

    assert out.shape == (B, N, C)
    assert jnp.allclose(out, ref, atol=1e-4, rtol=1e-4), \
        f"max abs err = {jnp.max(jnp.abs(out - ref))}"

    print("KERNEL_OK")
</pallas_src>

<mosaic_0001>
module attributes {stable_mosaic.version = 11 : i64} {
  func.func @kernel(%arg0: i32, %arg1: memref<32x32xf32, #tpu.memory_space<vmem>>, %arg2: memref<32x96xf32, #tpu.memory_space<vmem>>, %arg3: memref<1x96xf32, #tpu.memory_space<vmem>>, %arg4: memref<8x16x16xf32, #tpu.memory_space<vmem>>, %arg5: memref<4x8x32xf32, #tpu.memory_space<vmem>>, %arg6: memref<1x32xf32, #tpu.memory_space<vmem>>, %arg7: memref<32x32xf32, #tpu.memory_space<vmem>>) attributes {dimension_semantics = [#tpu.dimension_semantics<parallel>], iteration_bounds = array<i64: 1>, scalar_prefetch = 0 : i64, scratch_operands = 0 : i64, tpu.core_type = #tpu.core_type<tc>, window_params = [{transform_indices = @transform_0, window_bounds = array<i64: 32, 32>}, {pipeline_mode = #tpu.pipeline_mode<synchronous>, transform_indices = @transform_1, window_bounds = array<i64: 32, 96>}, {pipeline_mode = #tpu.pipeline_mode<synchronous>, transform_indices = @transform_2, window_bounds = array<i64: 1, 96>}, {transform_indices = @transform_3, window_bounds = array<i64: 8, 16, 16>}, {pipeline_mode = #tpu.pipeline_mode<synchronous>, transform_indices = @transform_4, window_bounds = array<i64: 4, 8, 32>}, {pipeline_mode = #tpu.pipeline_mode<synchronous>, transform_indices = @transform_5, window_bounds = array<i64: 1, 32>}, {transform_indices = @transform_6, window_bounds = array<i64: 32, 32>}]} {
    %c0 = arith.constant 0 : index
    %c0_0 = arith.constant 0 : index
    %0 = vector.load %arg1[%c0, %c0_0] : memref<32x32xf32, #tpu.memory_space<vmem>>, vector<32x32xf32>
    %c0_1 = arith.constant 0 : index
    %c0_2 = arith.constant 0 : index
    %1 = vector.load %arg2[%c0_1, %c0_2] : memref<32x96xf32, #tpu.memory_space<vmem>>, vector<32x96xf32>
    %cst = arith.constant dense<0.000000e+00> : vector<32x96xf32>
    %2 = tpu.matmul %0, %1, %cst {dimension_numbers = #tpu.dot_dimension_numbers<[1], [0], [0], [1], [0, 0, 1, 1], [], []>} : vector<32x32xf32>, vector<32x96xf32>, vector<32x96xf32> -> vector<32x96xf32>
    %c0_3 = arith.constant 0 : index
    %c0_4 = arith.constant 0 : index
    %3 = vector.load %arg3[%c0_3, %c0_4] : memref<1x96xf32, #tpu.memory_space<vmem>>, vector<1x96xf32>
    %4 = vector.broadcast %3 : vector<1x96xf32> to vector<32x96xf32>
    %5 = arith.addf %2, %4 : vector<32x96xf32>
    %6 = vector.extract_strided_slice %5 {offsets = [0, 0], sizes = [16, 8], strides = [1, 1]} : vector<32x96xf32> to vector<16x8xf32>
    %7 = vector.extract_strided_slice %5 {offsets = [0, 32], sizes = [16, 8], strides = [1, 1]} : vector<32x96xf32> to vector<16x8xf32>
    %8 = vector.extract_strided_slice %5 {offsets = [0, 64], sizes = [16, 8], strides = [1, 1]} : vector<32x96xf32> to vector<16x8xf32>
    %9 = vector.extract_strided_slice %5 {offsets = [0, 8], sizes = [16, 8], strides = [1, 1]} : vector<32x96xf32> to vector<16x8xf32>
    %10 = vector.extract_strided_slice %5 {offsets = [0, 40], sizes = [16, 8], strides = [1, 1]} : vector<32x96xf32> to vector<16x8xf32>
    %11 = vector.extract_strided_slice %5 {offsets = [0, 72], sizes = [16, 8], strides = [1, 1]} : vector<32x96xf32> to vector<16x8xf32>
    %12 = vector.extract_strided_slice %5 {offsets = [0, 16], sizes = [16, 8], strides = [1, 1]} : vector<32x96xf32> to vector<16x8xf32>
    %13 = vector.extract_strided_slice %5 {offsets = [0, 48], sizes = [16, 8], strides = [1, 1]} : vector<32x96xf32> to vector<16x8xf32>
    %14 = vector.extract_strided_slice %5 {offsets = [0, 80], sizes = [16, 8], strides = [1, 1]} : vector<32x96xf32> to vector<16x8xf32>
    %15 = vector.extract_strided_slice %5 {offsets = [0, 24], sizes = [16, 8], strides = [1, 1]} : vector<32x96xf32> to vector<16x8xf32>
    %16 = vector.extract_strided_slice %5 {offsets = [0, 56], sizes = [16, 8], strides = [1, 1]} : vector<32x96xf32> to vector<16x8xf32>
    %17 = vector.extract_strided_slice %5 {offsets = [0, 88], sizes = [16, 8], strides = [1, 1]} : vector<32x96xf32> to vector<16x8xf32>
    %18 = vector.extract_strided_slice %5 {offsets = [16, 0], sizes = [16, 8], strides = [1, 1]} : vector<32x96xf32> to vector<16x8xf32>
    %19 = vector.extract_strided_slice %5 {offsets = [16, 32], sizes = [16, 8], strides = [1, 1]} : vector<32x96xf32> to vector<16x8xf32>
    %20 = vector.extract_strided_slice %5 {offsets = [16, 64], sizes = [16, 8], strides = [1, 1]} : vector<32x96xf32> to vector<16x8xf32>
    %21 = vector.extract_strided_slice %5 {offsets = [16, 8], sizes = [16, 8], strides = [1, 1]} : vector<32x96xf32> to vector<16x8xf32>
    %22 = vector.extract_strided_slice %5 {offsets = [16, 40], sizes = [16, 8], strides = [1, 1]} : vector<32x96xf32> to vector<16x8xf32>
    %23 = vector.extract_strided_slice %5 {offsets = [16, 72], sizes = [16, 8], strides = [1, 1]} : vector<32x96xf32> to vector<16x8xf32>
    %24 = vector.extract_strided_slice %5 {offsets = [16, 16], sizes = [16, 8], strides = [1, 1]} : vector<32x96xf32> to vector<16x8xf32>
    %25 = vector.extract_strided_slice %5 {offsets = [16, 48], sizes = [16, 8], strides = [1, 1]} : vector<32x96xf32> to vector<16x8xf32>
    %26 = vector.extract_strided_slice %5 {offsets = [16, 80], sizes = [16, 8], strides = [1, 1]} : vector<32x96xf32> to vector<16x8xf32>
    %27 = vector.extract_strided_slice %5 {offsets = [16, 24], sizes = [16, 8], strides = [1, 1]} : vector<32x96xf32> to vector<16x8xf32>
    %28 = vector.extract_strided_slice %5 {offsets = [16, 56], sizes = [16, 8], strides = [1, 1]} : vector<32x96xf32> to vector<16x8xf32>
    %29 = vector.extract_strided_slice %5 {offsets = [16, 88], sizes = [16, 8], strides = [1, 1]} : vector<32x96xf32> to vector<16x8xf32>
    %30 = vector.shape_cast %6 : vector<16x8xf32> to vector<1x16x8xf32>
    %31 = vector.shape_cast %9 : vector<16x8xf32> to vector<1x16x8xf32>
    %32 = vector.shape_cast %12 : vector<16x8xf32> to vector<1x16x8xf32>
    %33 = vector.shape_cast %15 : vector<16x8xf32> to vector<1x16x8xf32>
    %34 = vector.shape_cast %18 : vector<16x8xf32> to vector<1x16x8xf32>
    %35 = vector.shape_cast %21 : vector<16x8xf32> to vector<1x16x8xf32>
    %36 = vector.shape_cast %24 : vector<16x8xf32> to vector<1x16x8xf32>
    %37 = vector.shape_cast %27 : vector<16x8xf32> to vector<1x16x8xf32>
    %38 = tpu.concatenate %30, %31, %32, %33, %34, %35, %36, %37 in 0 : vector<1x16x8xf32>, vector<1x16x8xf32>, vector<1x16x8xf32>, vector<1x16x8xf32>, vector<1x16x8xf32>, vector<1x16x8xf32>, vector<1x16x8xf32>, vector<1x16x8xf32> -> vector<8x16x8xf32>
    %cst_5 = arith.constant 0.353553385 : f32
    %39 = vector.broadcast %cst_5 : f32 to vector<8x16x8xf32>
    %40 = arith.mulf %38, %39 : vector<8x16x8xf32>
    %41 = vector.shape_cast %7 : vector<16x8xf32> to vector<1x16x8xf32>
    %42 = vector.shape_cast %10 : vector<16x8xf32> to vector<1x16x8xf32>
    %43 = vector.shape_cast %13 : vector<16x8xf32> to vector<1x16x8xf32>
    %44 = vector.shape_cast %16 : vector<16x8xf32> to vector<1x16x8xf32>
    %45 = vector.shape_cast %19 : vector<16x8xf32> to vector<1x16x8xf32>
    %46 = vector.shape_cast %22 : vector<16x8xf32> to vector<1x16x8xf32>
    %47 = vector.shape_cast %25 : vector<16x8xf32> to vector<1x16x8xf32>
    %48 = vector.shape_cast %28 : vector<16x8xf32> to vector<1x16x8xf32>
    %49 = tpu.concatenate %41, %42, %43, %44, %45, %46, %47, %48 in 0 : vector<1x16x8xf32>, vector<1x16x8xf32>, vector<1x16x8xf32>, vector<1x16x8xf32>, vector<1x16x8xf32>, vector<1x16x8xf32>, vector<1x16x8xf32>, vector<1x16x8xf32> -> vector<8x16x8xf32>
    %50 = vector.shape_cast %8 : vector<16x8xf32> to vector<1x16x8xf32>
    %51 = vector.shape_cast %11 : vector<16x8xf32> to vector<1x16x8xf32>
    %52 = vector.shape_cast %14 : vector<16x8xf32> to vector<1x16x8xf32>
    %53 = vector.shape_cast %17 : vector<16x8xf32> to vector<1x16x8xf32>
    %54 = vector.shape_cast %20 : vector<16x8xf32> to vector<1x16x8xf32>
    %55 = vector.shape_cast %23 : vector<16x8xf32> to vector<1x16x8xf32>
    %56 = vector.shape_cast %26 : vector<16x8xf32> to vector<1x16x8xf32>
    %57 = vector.shape_cast %29 : vector<16x8xf32> to vector<1x16x8xf32>
    %58 = tpu.concatenate %50, %51, %52, %53, %54, %55, %56, %57 in 0 : vector<1x16x8xf32>, vector<1x16x8xf32>, vector<1x16x8xf32>, vector<1x16x8xf32>, vector<1x16x8xf32>, vector<1x16x8xf32>, vector<1x16x8xf32>, vector<1x16x8xf32> -> vector<8x16x8xf32>
    "tpu.trace_start"() <{level = 10 : i32, message = "bqd,bkd->bqk"}> : () -> ()
    %cst_6 = arith.constant dense<0.000000e+00> : vector<8x16x16xf32>
    %59 = tpu.matmul %40, %49, %cst_6 {dimension_numbers = #tpu.dot_dimension_numbers<[2], [2], [1], [1], [0, 0, 0, 1, 1, 1], [0], [0]>} : vector<8x16x8xf32>, vector<8x16x8xf32>, vector<8x16x16xf32> -> vector<8x16x16xf32>
    "tpu.trace_stop"() : () -> ()
    %c0_7 = arith.constant 0 : index
    %c0_8 = arith.constant 0 : index
    %c0_9 = arith.constant 0 : index
    %60 = vector.load %arg4[%c0_7, %c0_8, %c0_9] : memref<8x16x16xf32, #tpu.memory_space<vmem>>, vector<8x16x16xf32>
    %61 = arith.addf %59, %60 : vector<8x16x16xf32>
    %cst_10 = arith.constant dense<0xFF800000> : vector<8x16xf32>
    %62 = vector.multi_reduction <maximumf>, %61, %cst_10 [2] : vector<8x16x16xf32> to vector<8x16xf32>
    %63 = vector.shape_cast %62 : vector<8x16xf32> to vector<8x16x1xf32>
    %64 = vector.broadcast %63 : vector<8x16x1xf32> to vector<8x16x16xf32>
    %65 = arith.subf %61, %64 : vector<8x16x16xf32>
    %66 = math.exp %65 : vector<8x16x16xf32>
    %cst_11 = arith.constant dense<0.000000e+00> : vector<8x16xf32>
    %67 = vector.multi_reduction <add>, %66, %cst_11 [2] : vector<8x16x16xf32> to vector<8x16xf32>
    %68 = vector.shape_cast %67 : vector<8x16xf32> to vector<8x16x1xf32>
    %69 = tpu.reciprocal %68 : vector<8x16x1xf32> -> vector<8x16x1xf32>
    %70 = vector.broadcast %69 : vector<8x16x1xf32> to vector<8x16x16xf32>
    %71 = arith.mulf %66, %70 : vector<8x16x16xf32>
    "tpu.trace_start"() <{level = 10 : i32, message = "bqk,bkd->bqd"}> : () -> ()
    %cst_12 = arith.constant dense<0.000000e+00> : vector<8x16x8xf32>
    %72 = tpu.matmul %71, %58, %cst_12 {dimension_numbers = #tpu.dot_dimension_numbers<[2], [1], [1], [2], [0, 0, 0, 1, 1, 2], [0], [0]>} : vector<8x16x16xf32>, vector<8x16x8xf32>, vector<8x16x8xf32> -> vector<8x16x8xf32>
    "tpu.trace_stop"() : () -> ()
    %73 = vector.extract_strided_slice %72 {offsets = [0, 0, 0], sizes = [4, 16, 8], strides = [1, 1, 1]} : vector<8x16x8xf32> to vector<4x16x8xf32>
    %c0_13 = arith.constant 0 : index
    %c0_14 = arith.constant 0 : index
    %c0_15 = arith.constant 0 : index
    %74 = vector.load %arg5[%c0_13, %c0_14, %c0_15] : memref<4x8x32xf32, #tpu.memory_space<vmem>>, vector<4x8x32xf32>
    "tpu.trace_start"() <{level = 10 : i32, message = "hnd,hdc->hnc"}> : () -> ()
    %cst_16 = arith.constant dense<0.000000e+00> : vector<4x16x32xf32>
    %75 = tpu.matmul %73, %74, %cst_16 {dimension_numbers = #tpu.dot_dimension_numbers<[2], [1], [1], [2], [0, 0, 0, 1, 1, 2], [0], [0]>} : vector<4x16x8xf32>, vector<4x8x32xf32>, vector<4x16x32xf32> -> vector<4x16x32xf32>
    "tpu.trace_stop"() : () -> ()
    %cst_17 = arith.constant dense<0.000000e+00> : vector<16x32xf32>
    %76 = vector.multi_reduction <add>, %75, %cst_17 [0] : vector<4x16x32xf32> to vector<16x32xf32>
    %c0_18 = arith.constant 0 : index
    %c0_19 = arith.constant 0 : index
    %77 = vector.load %arg6[%c0_18, %c0_19] : memref<1x32xf32, #tpu.memory_space<vmem>>, vector<1x32xf32>
    %78 = vector.broadcast %77 : vector<1x32xf32> to vector<16x32xf32>
    %79 = arith.addf %76, %78 : vector<16x32xf32>
    %c0_20 = arith.constant 0 : index
    %c0_21 = arith.constant 0 : index
    %80 = vector.load %arg7[%c0_20, %c0_21] : memref<32x32xf32, #tpu.memory_space<vmem>>, vector<16x32xf32>
    tpu.vector_store %arg7[%c0_20, %c0_21], %79 {strides = array<i32>} : memref<32x32xf32, #tpu.memory_space<vmem>>, vector<16x32xf32>,
    %81 = vector.extract_strided_slice %72 {offsets = [4, 0, 0], sizes = [4, 16, 8], strides = [1, 1, 1]} : vector<8x16x8xf32> to vector<4x16x8xf32>
    %c0_22 = arith.constant 0 : index
    %c0_23 = arith.constant 0 : index
    %c0_24 = arith.constant 0 : index
    %82 = vector.load %arg5[%c0_22, %c0_23, %c0_24] : memref<4x8x32xf32, #tpu.memory_space<vmem>>, vector<4x8x32xf32>
    "tpu.trace_start"() <{level = 10 : i32, message = "hnd,hdc->hnc"}> : () -> ()
    %cst_25 = arith.constant dense<0.000000e+00> : vector<4x16x32xf32>
    %83 = tpu.matmul %81, %82, %cst_25 {dimension_numbers = #tpu.dot_dimension_numbers<[2], [1], [1], [2], [0, 0, 0, 1, 1, 2], [0], [0]>} : vector<4x16x8xf32>, vector<4x8x32xf32>, vector<4x16x32xf32> -> vector<4x16x32xf32>
    "tpu.trace_stop"() : () -> ()
    %cst_26 = arith.constant dense<0.000000e+00> : vector<16x32xf32>
    %84 = vector.multi_reduction <add>, %83, %cst_26 [0] : vector<4x16x32xf32> to vector<16x32xf32>
    %c0_27 = arith.constant 0 : index
    %c0_28 = arith.constant 0 : index
    %85 = vector.load %arg6[%c0_27, %c0_28] : memref<1x32xf32, #tpu.memory_space<vmem>>, vector<1x32xf32>
    %86 = vector.broadcast %85 : vector<1x32xf32> to vector<16x32xf32>
    %87 = arith.addf %84, %86 : vector<16x32xf32>
    %c16 = arith.constant 16 : index
    %c0_29 = arith.constant 0 : index
    %88 = vector.load %arg7[%c16, %c0_29] : memref<32x32xf32, #tpu.memory_space<vmem>>, vector<16x32xf32>
    tpu.vector_store %arg7[%c16, %c0_29], %87 {strides = array<i32>} : memref<32x32xf32, #tpu.memory_space<vmem>>, vector<16x32xf32>,
    return
  }
  func.func @transform_0(%arg0: i32) -> (i32, i32) {
    %c0_i32 = arith.constant 0 : i32
    %c0_i32_0 = arith.constant 0 : i32
    return %arg0, %c0_i32 : i32, i32
  }
  func.func @transform_1(%arg0: i32) -> (i32, i32) {
    %c0_i32 = arith.constant 0 : i32
    %c0_i32_0 = arith.constant 0 : i32
    %c0_i32_1 = arith.constant 0 : i32
    return %c0_i32, %c0_i32_0 : i32, i32
  }
  func.func @transform_2(%arg0: i32) -> (i32, i32) {
    %c0_i32 = arith.constant 0 : i32
    %c0_i32_0 = arith.constant 0 : i32
    %c0_i32_1 = arith.constant 0 : i32
    return %c0_i32, %c0_i32_0 : i32, i32
  }
  func.func @transform_3(%arg0: i32) -> (i32, i32, i32) {
    %c0_i32 = arith.constant 0 : i32
    %c0_i32_0 = arith.constant 0 : i32
    %c0_i32_1 = arith.constant 0 : i32
    return %arg0, %c0_i32, %c0_i32_0 : i32, i32, i32
  }
  func.func @transform_4(%arg0: i32) -> (i32, i32, i32) {
    %c0_i32 = arith.constant 0 : i32
    %c0_i32_0 = arith.constant 0 : i32
    %c0_i32_1 = arith.constant 0 : i32
    %c0_i32_2 = arith.constant 0 : i32
    return %c0_i32, %c0_i32_0, %c0_i32_1 : i32, i32, i32
  }
  func.func @transform_5(%arg0: i32) -> (i32, i32) {
    %c0_i32 = arith.constant 0 : i32
    %c0_i32_0 = arith.constant 0 : i32
    %c0_i32_1 = arith.constant 0 : i32
    return %c0_i32, %c0_i32_0 : i32, i32
  }
  func.func @transform_6(%arg0: i32) -> (i32, i32) {
    %c0_i32 = arith.constant 0 : i32
    %c0_i32_0 = arith.constant 0 : i32
    return %arg0, %c0_i32 : i32, i32
  }
}

module attributes {stable_mosaic.version = 11 : i64} {
  func.func @kernel(%arg0: i32, %arg1: memref<32x32xf32, #tpu.memory_space<vmem>>, %arg2: memref<32x96xf32, #tpu.memory_space<vmem>>, %arg3: memref<1x96xf32, #tpu.memory_space<vmem>>, %arg4: memref<8x16x16xf32, #tpu.memory_space<vmem>>, %arg5: memref<4x8x32xf32, #tpu.memory_space<vmem>>, %arg6: memref<1x32xf32, #tpu.memory_space<vmem>>, %arg7: memref<32x32xf32, #tpu.memory_space<vmem>>) attributes {dimension_semantics = [#tpu.dimension_semantics<parallel>], iteration_bounds = array<i64: 1>, scalar_prefetch = 0 : i64, scratch_operands = 0 : i64, tpu.core_type = #tpu.core_type<tc>, window_params = [{transform_indices = @transform_0, window_bounds = array<i64: 32, 32>}, {pipeline_mode = #tpu.pipeline_mode<synchronous>, transform_indices = @transform_1, window_bounds = array<i64: 32, 96>}, {pipeline_mode = #tpu.pipeline_mode<synchronous>, transform_indices = @transform_2, window_bounds = array<i64: 1, 96>}, {transform_indices = @transform_3, window_bounds = array<i64: 8, 16, 16>}, {pipeline_mode = #tpu.pipeline_mode<synchronous>, transform_indices = @transform_4, window_bounds = array<i64: 4, 8, 32>}, {pipeline_mode = #tpu.pipeline_mode<synchronous>, transform_indices = @transform_5, window_bounds = array<i64: 1, 32>}, {transform_indices = @transform_6, window_bounds = array<i64: 32, 32>}]} {
    %c0 = arith.constant 0 : index
    %c0_0 = arith.constant 0 : index
    %0 = vector.load %arg1[%c0, %c0_0] : memref<32x32xf32, #tpu.memory_space<vmem>>, vector<32x32xf32>
    %c0_1 = arith.constant 0 : index
    %c0_2 = arith.constant 0 : index
    %1 = vector.load %arg2[%c0_1, %c0_2] : memref<32x96xf32, #tpu.memory_space<vmem>>, vector<32x96xf32>
    %cst = arith.constant dense<0.000000e+00> : vector<32x96xf32>
    %2 = tpu.matmul %0, %1, %cst {dimension_numbers = #tpu.dot_dimension_numbers<[1], [0], [0], [1], [0, 0, 1, 1], [], []>} : vector<32x32xf32>, vector<32x96xf32>, vector<32x96xf32> -> vector<32x96xf32>
    %c0_3 = arith.constant 0 : index
    %c0_4 = arith.constant 0 : index
    %3 = vector.load %arg3[%c0_3, %c0_4] : memref<1x96xf32, #tpu.memory_space<vmem>>, vector<1x96xf32>
    %4 = vector.broadcast %3 : vector<1x96xf32> to vector<32x96xf32>
    %5 = arith.addf %2, %4 : vector<32x96xf32>
    %6 = vector.extract_strided_slice %5 {offsets = [0, 0], sizes = [16, 8], strides = [1, 1]} : vector<32x96xf32> to vector<16x8xf32>
    %7 = vector.extract_strided_slice %5 {offsets = [0, 32], sizes = [16, 8], strides = [1, 1]} : vector<32x96xf32> to vector<16x8xf32>
    %8 = vector.extract_strided_slice %5 {offsets = [0, 64], sizes = [16, 8], strides = [1, 1]} : vector<32x96xf32> to vector<16x8xf32>
    %9 = vector.extract_strided_slice %5 {offsets = [0, 8], sizes = [16, 8], strides = [1, 1]} : vector<32x96xf32> to vector<16x8xf32>
    %10 = vector.extract_strided_slice %5 {offsets = [0, 40], sizes = [16, 8], strides = [1, 1]} : vector<32x96xf32> to vector<16x8xf32>
    %11 = vector.extract_strided_slice %5 {offsets = [0, 72], sizes = [16, 8], strides = [1, 1]} : vector<32x96xf32> to vector<16x8xf32>
    %12 = vector.extract_strided_slice %5 {offsets = [0, 16], sizes = [16, 8], strides = [1, 1]} : vector<32x96xf32> to vector<16x8xf32>
    %13 = vector.extract_strided_slice %5 {offsets = [0, 48], sizes = [16, 8], strides = [1, 1]} : vector<32x96xf32> to vector<16x8xf32>
    %14 = vector.extract_strided_slice %5 {offsets = [0, 80], sizes = [16, 8], strides = [1, 1]} : vector<32x96xf32> to vector<16x8xf32>
    %15 = vector.extract_strided_slice %5 {offsets = [0, 24], sizes = [16, 8], strides = [1, 1]} : vector<32x96xf32> to vector<16x8xf32>
    %16 = vector.extract_strided_slice %5 {offsets = [0, 56], sizes = [16, 8], strides = [1, 1]} : vector<32x96xf32> to vector<16x8xf32>
    %17 = vector.extract_strided_slice %5 {offsets = [0, 88], sizes = [16, 8], strides = [1, 1]} : vector<32x96xf32> to vector<16x8xf32>
    %18 = vector.extract_strided_slice %5 {offsets = [16, 0], sizes = [16, 8], strides = [1, 1]} : vector<32x96xf32> to vector<16x8xf32>
    %19 = vector.extract_strided_slice %5 {offsets = [16, 32], sizes = [16, 8], strides = [1, 1]} : vector<32x96xf32> to vector<16x8xf32>
    %20 = vector.extract_strided_slice %5 {offsets = [16, 64], sizes = [16, 8], strides = [1, 1]} : vector<32x96xf32> to vector<16x8xf32>
    %21 = vector.extract_strided_slice %5 {offsets = [16, 8], sizes = [16, 8], strides = [1, 1]} : vector<32x96xf32> to vector<16x8xf32>
    %22 = vector.extract_strided_slice %5 {offsets = [16, 40], sizes = [16, 8], strides = [1, 1]} : vector<32x96xf32> to vector<16x8xf32>
    %23 = vector.extract_strided_slice %5 {offsets = [16, 72], sizes = [16, 8], strides = [1, 1]} : vector<32x96xf32> to vector<16x8xf32>
    %24 = vector.extract_strided_slice %5 {offsets = [16, 16], sizes = [16, 8], strides = [1, 1]} : vector<32x96xf32> to vector<16x8xf32>
    %25 = vector.extract_strided_slice %5 {offsets = [16, 48], sizes = [16, 8], strides = [1, 1]} : vector<32x96xf32> to vector<16x8xf32>
    %26 = vector.extract_strided_slice %5 {offsets = [16, 80], sizes = [16, 8], strides = [1, 1]} : vector<32x96xf32> to vector<16x8xf32>
    %27 = vector.extract_strided_slice %5 {offsets = [16, 24], sizes = [16, 8], strides = [1, 1]} : vector<32x96xf32> to vector<16x8xf32>
    %28 = vector.extract_strided_slice %5 {offsets = [16, 56], sizes = [16, 8], strides = [1, 1]} : vector<32x96xf32> to vector<16x8xf32>
    %29 = vector.extract_strided_slice %5 {offsets = [16, 88], sizes = [16, 8], strides = [1, 1]} : vector<32x96xf32> to vector<16x8xf32>
    %30 = vector.shape_cast %6 : vector<16x8xf32> to vector<1x16x8xf32>
    %31 = vector.shape_cast %9 : vector<16x8xf32> to vector<1x16x8xf32>
    %32 = vector.shape_cast %12 : vector<16x8xf32> to vector<1x16x8xf32>
    %33 = vector.shape_cast %15 : vector<16x8xf32> to vector<1x16x8xf32>
    %34 = vector.shape_cast %18 : vector<16x8xf32> to vector<1x16x8xf32>
    %35 = vector.shape_cast %21 : vector<16x8xf32> to vector<1x16x8xf32>
    %36 = vector.shape_cast %24 : vector<16x8xf32> to vector<1x16x8xf32>
    %37 = vector.shape_cast %27 : vector<16x8xf32> to vector<1x16x8xf32>
    %38 = tpu.concatenate %30, %31, %32, %33, %34, %35, %36, %37 in 0 : vector<1x16x8xf32>, vector<1x16x8xf32>, vector<1x16x8xf32>, vector<1x16x8xf32>, vector<1x16x8xf32>, vector<1x16x8xf32>, vector<1x16x8xf32>, vector<1x16x8xf32> -> vector<8x16x8xf32>
    %cst_5 = arith.constant 0.353553385 : f32
    %39 = vector.broadcast %cst_5 : f32 to vector<8x16x8xf32>
    %40 = arith.mulf %38, %39 : vector<8x16x8xf32>
    %41 = vector.shape_cast %7 : vector<16x8xf32> to vector<1x16x8xf32>
    %42 = vector.shape_cast %10 : vector<16x8xf32> to vector<1x16x8xf32>
    %43 = vector.shape_cast %13 : vector<16x8xf32> to vector<1x16x8xf32>
    %44 = vector.shape_cast %16 : vector<16x8xf32> to vector<1x16x8xf32>
    %45 = vector.shape_cast %19 : vector<16x8xf32> to vector<1x16x8xf32>
    %46 = vector.shape_cast %22 : vector<16x8xf32> to vector<1x16x8xf32>
    %47 = vector.shape_cast %25 : vector<16x8xf32> to vector<1x16x8xf32>
    %48 = vector.shape_cast %28 : vector<16x8xf32> to vector<1x16x8xf32>
    %49 = tpu.concatenate %41, %42, %43, %44, %45, %46, %47, %48 in 0 : vector<1x16x8xf32>, vector<1x16x8xf32>, vector<1x16x8xf32>, vector<1x16x8xf32>, vector<1x16x8xf32>, vector<1x16x8xf32>, vector<1x16x8xf32>, vector<1x16x8xf32> -> vector<8x16x8xf32>
    %50 = vector.shape_cast %8 : vector<16x8xf32> to vector<1x16x8xf32>
    %51 = vector.shape_cast %11 : vector<16x8xf32> to vector<1x16x8xf32>
    %52 = vector.shape_cast %14 : vector<16x8xf32> to vector<1x16x8xf32>
    %53 = vector.shape_cast %17 : vector<16x8xf32> to vector<1x16x8xf32>
    %54 = vector.shape_cast %20 : vector<16x8xf32> to vector<1x16x8xf32>
    %55 = vector.shape_cast %23 : vector<16x8xf32> to vector<1x16x8xf32>
    %56 = vector.shape_cast %26 : vector<16x8xf32> to vector<1x16x8xf32>
    %57 = vector.shape_cast %29 : vector<16x8xf32> to vector<1x16x8xf32>
    %58 = tpu.concatenate %50, %51, %52, %53, %54, %55, %56, %57 in 0 : vector<1x16x8xf32>, vector<1x16x8xf32>, vector<1x16x8xf32>, vector<1x16x8xf32>, vector<1x16x8xf32>, vector<1x16x8xf32>, vector<1x16x8xf32>, vector<1x16x8xf32> -> vector<8x16x8xf32>
    "tpu.trace_start"() <{level = 10 : i32, message = "bqd,bkd->bqk"}> : () -> ()
    %cst_6 = arith.constant dense<0.000000e+00> : vector<8x16x16xf32>
    %59 = tpu.matmul %40, %49, %cst_6 {dimension_numbers = #tpu.dot_dimension_numbers<[2], [2], [1], [1], [0, 0, 0, 1, 1, 1], [0], [0]>} : vector<8x16x8xf32>, vector<8x16x8xf32>, vector<8x16x16xf32> -> vector<8x16x16xf32>
    "tpu.trace_stop"() : () -> ()
    %c0_7 = arith.constant 0 : index
    %c0_8 = arith.constant 0 : index
    %c0_9 = arith.constant 0 : index
    %60 = vector.load %arg4[%c0_7, %c0_8, %c0_9] : memref<8x16x16xf32, #tpu.memory_space<vmem>>, vector<8x16x16xf32>
    %61 = arith.addf %59, %60 : vector<8x16x16xf32>
    %cst_10 = arith.constant dense<0xFF800000> : vector<8x16xf32>
    %62 = vector.multi_reduction <maximumf>, %61, %cst_10 [2] : vector<8x16x16xf32> to vector<8x16xf32>
    %63 = vector.shape_cast %62 : vector<8x16xf32> to vector<8x16x1xf32>
    %64 = vector.broadcast %63 : vector<8x16x1xf32> to vector<8x16x16xf32>
    %65 = arith.subf %61, %64 : vector<8x16x16xf32>
    %66 = math.exp %65 : vector<8x16x16xf32>
    %cst_11 = arith.constant dense<0.000000e+00> : vector<8x16xf32>
    %67 = vector.multi_reduction <add>, %66, %cst_11 [2] : vector<8x16x16xf32> to vector<8x16xf32>
    %68 = vector.shape_cast %67 : vector<8x16xf32> to vector<8x16x1xf32>
    %69 = tpu.reciprocal %68 : vector<8x16x1xf32> -> vector<8x16x1xf32>
    %70 = vector.broadcast %69 : vector<8x16x1xf32> to vector<8x16x16xf32>
    %71 = arith.mulf %66, %70 : vector<8x16x16xf32>
    "tpu.trace_start"() <{level = 10 : i32, message = "bqk,bkd->bqd"}> : () -> ()
    %cst_12 = arith.constant dense<0.000000e+00> : vector<8x16x8xf32>
    %72 = tpu.matmul %71, %58, %cst_12 {dimension_numbers = #tpu.dot_dimension_numbers<[2], [1], [1], [2], [0, 0, 0, 1, 1, 2], [0], [0]>} : vector<8x16x16xf32>, vector<8x16x8xf32>, vector<8x16x8xf32> -> vector<8x16x8xf32>
    "tpu.trace_stop"() : () -> ()
    %73 = vector.extract_strided_slice %72 {offsets = [0, 0, 0], sizes = [4, 16, 8], strides = [1, 1, 1]} : vector<8x16x8xf32> to vector<4x16x8xf32>
    %c0_13 = arith.constant 0 : index
    %c0_14 = arith.constant 0 : index
    %c0_15 = arith.constant 0 : index
    %74 = vector.load %arg5[%c0_13, %c0_14, %c0_15] : memref<4x8x32xf32, #tpu.memory_space<vmem>>, vector<4x8x32xf32>
    "tpu.trace_start"() <{level = 10 : i32, message = "hnd,hdc->hnc"}> : () -> ()
    %cst_16 = arith.constant dense<0.000000e+00> : vector<4x16x32xf32>
    %75 = tpu.matmul %73, %74, %cst_16 {dimension_numbers = #tpu.dot_dimension_numbers<[2], [1], [1], [2], [0, 0, 0, 1, 1, 2], [0], [0]>} : vector<4x16x8xf32>, vector<4x8x32xf32>, vector<4x16x32xf32> -> vector<4x16x32xf32>
    "tpu.trace_stop"() : () -> ()
    %cst_17 = arith.constant dense<0.000000e+00> : vector<16x32xf32>
    %76 = vector.multi_reduction <add>, %75, %cst_17 [0] : vector<4x16x32xf32> to vector<16x32xf32>
    %c0_18 = arith.constant 0 : index
    %c0_19 = arith.constant 0 : index
    %77 = vector.load %arg6[%c0_18, %c0_19] : memref<1x32xf32, #tpu.memory_space<vmem>>, vector<1x32xf32>
    %78 = vector.broadcast %77 : vector<1x32xf32> to vector<16x32xf32>
    %79 = arith.addf %76, %78 : vector<16x32xf32>
    %c0_20 = arith.constant 0 : index
    %c0_21 = arith.constant 0 : index
    %80 = vector.load %arg7[%c0_20, %c0_21] : memref<32x32xf32, #tpu.memory_space<vmem>>, vector<16x32xf32>
    tpu.vector_store %arg7[%c0_20, %c0_21], %79 {strides = array<i32>} : memref<32x32xf32, #tpu.memory_space<vmem>>, vector<16x32xf32>,
    %81 = vector.extract_strided_slice %72 {offsets = [4, 0, 0], sizes = [4, 16, 8], strides = [1, 1, 1]} : vector<8x16x8xf32> to vector<4x16x8xf32>
    %c0_22 = arith.constant 0 : index
    %c0_23 = arith.constant 0 : index
    %c0_24 = arith.constant 0 : index
    %82 = vector.load %arg5[%c0_22, %c0_23, %c0_24] : memref<4x8x32xf32, #tpu.memory_space<vmem>>, vector<4x8x32xf32>
    "tpu.trace_start"() <{level = 10 : i32, message = "hnd,hdc->hnc"}> : () -> ()
    %cst_25 = arith.constant dense<0.000000e+00> : vector<4x16x32xf32>
    %83 = tpu.matmul %81, %82, %cst_25 {dimension_numbers = #tpu.dot_dimension_numbers<[2], [1], [1], [2], [0, 0, 0, 1, 1, 2], [0], [0]>} : vector<4x16x8xf32>, vector<4x8x32xf32>, vector<4x16x32xf32> -> vector<4x16x32xf32>
    "tpu.trace_stop"() : () -> ()
    %cst_26 = arith.constant dense<0.000000e+00> : vector<16x32xf32>
    %84 = vector.multi_reduction <add>, %83, %cst_26 [0] : vector<4x16x32xf32> to vector<16x32xf32>
    %c0_27 = arith.constant 0 : index
    %c0_28 = arith.constant 0 : index
    %85 = vector.load %arg6[%c0_27, %c0_28] : memref<1x32xf32, #tpu.memory_space<vmem>>, vector<1x32xf32>
    %86 = vector.broadcast %85 : vector<1x32xf32> to vector<16x32xf32>
    %87 = arith.addf %84, %86 : vector<16x32xf32>
    %c16 = arith.constant 16 : index
    %c0_29 = arith.constant 0 : index
    %88 = vector.load %arg7[%c16, %c0_29] : memref<32x32xf32, #tpu.memory_space<vmem>>, vector<16x32xf32>
    tpu.vector_store %arg7[%c16, %c0_29], %87 {strides = array<i32>} : memref<32x32xf32, #tpu.memory_space<vmem>>, vector<16x32xf32>,
    return
  }
  func.func @transform_0(%arg0: i32) -> (i32, i32) {
    %c0_i32 = arith.constant 0 : i32
    %c0_i32_0 = arith.constant 0 : i32
    return %arg0, %c0_i32 : i32, i32
  }
  func.func @transform_1(%arg0: i32) -> (i32, i32) {
    %c0_i32 = arith.constant 0 : i32
    %c0_i32_0 = arith.constant 0 : i32
    %c0_i32_1 = arith.constant 0 : i32
    return %c0_i32, %c0_i32_0 : i32, i32
  }
  func.func @transform_2(%arg0: i32) -> (i32, i32) {
    %c0_i32 = arith.constant 0 : i32
    %c0_i32_0 = arith.constant 0 : i32
    %c0_i32_1 = arith.constant 0 : i32
    return %c0_i32, %c0_i32_0 : i32, i32
  }
  func.func @transform_3(%arg0: i32) -> (i32, i32, i32) {
    %c0_i32 = arith.constant 0 : i32
    %c0_i32_0 = arith.constant 0 : i32
    %c0_i32_1 = arith.constant 0 : i32
    return %arg0, %c0_i32, %c0_i32_0 : i32, i32, i32
  }
  func.func @transform_4(%arg0: i32) -> (i32, i32, i32) {
    %c0_i32 = arith.constant 0 : i32
    %c0_i32_0 = arith.constant 0 : i32
    %c0_i32_1 = arith.constant 0 : i32
    %c0_i32_2 = arith.constant 0 : i32
    return %c0_i32, %c0_i32_0, %c0_i32_1 : i32, i32, i32
  }
  func.func @transform_5(%arg0: i32) -> (i32, i32) {
    %c0_i32 = arith.constant 0 : i32
    %c0_i32_0 = arith.constant 0 : i32
    %c0_i32_1 = arith.constant 0 : i32
    return %c0_i32, %c0_i32_0 : i32, i32
  }
  func.func @transform_6(%arg0: i32) -> (i32, i32) {
    %c0_i32 = arith.constant 0 : i32
    %c0_i32_0 = arith.constant 0 : i32
    return %arg0, %c0_i32 : i32, i32
  }
}

</mosaic_0001>

<bundles_post_ra>
// kernel: tpu_custom_call.1
= control target key start
LH: loop header
LB: loop body
LE: loop exit
PB: predicated region body
PF: predicated region fallthrough
CT: control target
= control target key end

     0   :  { %11 = vsyncpa [#allocation3], 0  ;;  %s3575_s0 = inlined_call_operand.hbm [shape: f32[32,32], index: 0, kind: input, shape index: {}]   ;;  %s3576_s1 = inlined_call_operand.hbm [shape: f32[32,96], index: 1, kind: input, shape index: {}]   ;;  %s3577_s2 = inlined_call_operand.vmem [shape: f32[1,96], index: 2, kind: input, shape index: {}]   ;;  %s3578_s3 = inlined_call_operand.hbm [shape: f32[8,16,16], index: 3, kind: input, shape index: {}]   ;;  %s3579_s4 = inlined_call_operand.hbm [shape: f32[4,8,32], index: 4, kind: input, shape index: {}]   ;;  %s3580_s5 = inlined_call_operand.vmem [shape: f32[1,32], index: 5, kind: input, shape index: {}]   ;;  %s3581_s6 = inlined_call_operand.hbm [shape: f32[32,32], index: 6, kind: output, shape index: {}]  }
   0x1   :  { %12 = vsyncpa [#allocation6], 0 }
   0x2   :  { %13 = vsyncpa [#allocation9], 0 }
   0x3   :  { %14 = vsyncpa [#allocation4], 0  ;;  %s3092_s21 = smov [#allocation5]   ;;  %s3093_s23 = smov [#allocation2]  }
   0x4   :  { %s32_s22 = sshll.u32 %s3092_s21, 4  ;;  %s20_s24 = sshll.u32 %s3093_s23, 4  ;;  %s33_s22 = int_to_ptr.vmem [resolvable:$true] %s32_s22  ;;  %s21_s24 = int_to_ptr.vmem [resolvable:$true] %s20_s24 }
   0x5   :  { %s2992_s25 = scalar_lea.vmem %s33_s22, 512  ;;  %p2997_p1 = scmp.lt.s32.totalorder %s33_s22, %s33_s22 }
   0x6   :  { %p2993_p0 = scmp.ne.s32.totalorder %s33_s22, %s2992_s25  ;;  %p2998_p2 = scmp.lt.s32.totalorder %s2992_s25, %s2992_s25 }
   0x8   :  { %p2999_p3 = por %p2998_p2, %p2997_p1 }
   0xa   :  { %p3000_p4 = pnand %p2999_p3, %p2993_p0 }
   0xc   :  { %3003 = shalt.err (!%p3000_p4)
}
   0xd   :  { %s3094_s26 = smov 128   ;;  %s3095_s27 = smov 8  }
   0xe   :  { %38 = dma.hbm_to_vmem [thread:$0]  %s3576_s1, 512, %s33_s22, [#allocation6], %s3094_s26, %s3094_s26, %s3095_s27  }
   0xf   :  { %s3012_s30 = scalar_lea.vmem %s21_s24, 512  ;;  %p3017_p6 = scmp.lt.s32.totalorder %s21_s24, %s21_s24 }
  0x10   :  { %p3013_p5 = scmp.ne.s32.totalorder %s21_s24, %s3012_s30  ;;  %p3018_p7 = scmp.lt.s32.totalorder %s3012_s30, %s3012_s30 }
  0x12   :  { %p3019_p8 = por %p3018_p7, %p3017_p6 }
  0x14   :  { %p3020_p9 = pnand %p3019_p8, %p3013_p5 }
  0x16   :  { %3023 = shalt.err (!%p3020_p9)
}
  0x17   :  { %26 = dma.hbm_to_vmem [thread:$0]  %s3575_s0, 512, %s21_s24, [#allocation3], %s3094_s26, %s3094_s26, %s3095_s27  }
  0x18   :  { %s3096_s9 = smov [#allocation7]   ;;  %s3097_s11 = smov [#allocation8]  }
  0x19   :  { %s46_s10 = sshll.u32 %s3096_s9, 4  ;;  %s58_s12 = sshll.u32 %s3097_s11, 4  ;;  %s47_s10 = int_to_ptr.vmem [resolvable:$true] %s46_s10  ;;  %s59_s12 = int_to_ptr.vmem [resolvable:$true] %s58_s12 }
  0x1a   :  { %s3032_s1 = scalar_lea.vmem %s47_s10, 2048  ;;  %p3037_p11 = scmp.lt.s32.totalorder %s47_s10, %s47_s10 }
  0x1b   :  { %p3033_p10 = scmp.ne.s32.totalorder %s47_s10, %s3032_s1  ;;  %p3038_p12 = scmp.lt.s32.totalorder %s3032_s1, %s3032_s1 }
  0x1d   :  { %p3039_p13 = por %p3038_p12, %p3037_p11 }
  0x1f   :  { %p3040_p0 = pnand %p3039_p13, %p3033_p10 }
  0x21   :  { %3043 = shalt.err (!%p3040_p0)
}
  0x22   :  { %52 = dma.hbm_to_vmem [thread:$0]  %s3578_s3, 2048, %s47_s10, [#allocation6], %s3094_s26, %s3094_s26, %s3095_s27  }
  0x23   :  { %s3052_s0 = scalar_lea.vmem %s59_s12, 512  ;;  %p3057_p2 = scmp.lt.s32.totalorder %s59_s12, %s59_s12 }
  0x24   :  { %p3053_p1 = scmp.ne.s32.totalorder %s59_s12, %s3052_s0  ;;  %p3058_p3 = scmp.lt.s32.totalorder %s3052_s0, %s3052_s0 }
  0x26   :  { %p3059_p4 = por %p3058_p3, %p3057_p2 }
  0x28   :  { %p3060_p5 = pnand %p3059_p4, %p3053_p1 }
  0x2a   :  { %3063 = shalt.err (!%p3060_p5)
}
  0x2b   :  { %64 = dma.hbm_to_vmem [thread:$0]  %s3579_s4, 512, %s59_s12, [#allocation9], %s3094_s26, %s3094_s26, %s3095_s27  }
  0x2c   :  { %3084 = dma.done.wait [#allocation3], 512  }
  0x2d   :  { %3085 = vsyncadd [#allocation3], 4294966784 }
  0x2e   :  { %3086 = dma.done.wait [#allocation6], 2560  }
  0x2f   :  { %3087 = vsyncadd [#allocation6], 4294964736 }
  0x30   :  { %3088 = dma.done.wait [#allocation9], 512  }
  0x31   :  { %3089 = vsyncadd [#allocation9], 4294966784  ;;  %vm94_vm0 = vcmask 261120   ;;  %v86_v0 = vld [vmem:[#allocation5 + $0x18] sm:$0xff]  ;;  %v85_v1 = vld [vmem:[#allocation5 + $0x10] sm:$0xff]  ;;  %s3098_s17 = smov 112  }
  0x32   :  { %2742 = vmatprep.subr.mxu0 %v86_v0  ;;  %v79_v2 = vld [vmem:[#allocation2] sm:$0xff]  ;;  %v84_v3 = vld [vmem:[#allocation5 + $0x8] sm:$0xff]  ;;  %v81_v6 = vld [vmem:[#allocation2 + $0x10] sm:$0xff]  ;;  %s3099_s18 = smov 120   ;;  %vm268_vm1 = vcmask 64512   ;;  %s3100_s19 = smov 104  }
  0x33   :  { %2743 = vmatpush3.msra.mxu0 %v86_v0  ;;  %2750 = vmatprep.mubr.msk.f32.mxu0 %vm94_vm0, %v79_v2  ;;  %v83_v4 = vld [vmem:[#allocation5] sm:$0xff]  ;;  %v80_v5 = vld [vmem:[#allocation2 + $0x8] sm:$0xff]  ;;  %v82_v7 = vld [vmem:[#allocation2 + $0x18] sm:$0xff]  ;;  %s3102_s20 = smov 64   ;;  %vm977_vm2 = vcmask 130048  }
  0x34   :  { %2744 = vmatprep.subr.mxu0 %v85_v1  ;;  %v2575_v8 = vld [vmem:[%s3577_s2] ss:$0 sm:$0xff]  ;;  %s3101_s2 = smov 96  }
  0x35   :  { %2745 = vmatpush3.msra.mxu0 %v85_v1 }
  0x36   :  { %2746 = vmatprep.subr.mxu0 %v84_v3 }
  0x37   :  { %2747 = vmatpush3.msra.mxu0 %v84_v3 }
  0x38   :  { %2748 = vmatprep.subr.mxu0 %v83_v4 }
  0x39   :  { %2749 = vmatpush3.msra.mxu0 %v83_v4 }
  0x3a   :  { %2751 = vmatmul.mubr.msk.f32.vlgmr.msra.gmra.mxu0 %vm94_vm0, %v80_v5  ;;  %v249_v5 = vld [vmem:[#allocation7 + $0x8] sm:$0xff] }
  0x3b   :  { %2753 = vmatprep.mubr.msk.f32.mxu0 %vm94_vm0, %v81_v6 }
  0x3e   :  { %2754 = vmatmul.mubr.msk.f32.gmra.mxu0 %vm94_vm0, %v82_v7  ;;  %v248_v7 = vld [vmem:[#allocation7] sm:$0xff] }
  0xfa   :  { %v2752_v9 = vpop.f32.mrf.mxu0 }
  0xfb   :  { %v3170_v10 = vadd.f32 %v2752_v9, %v2575_v8 }
  0xfc   :  { %v173_v11 = vpop.f32.mrf.mxu0 }
  0xfd   :  { %v174_v12 = vadd.f32 %v2575_v8, %v173_v11  ;;  %202 = vrot.lane.b32.xlu1 %v3170_v10, %s3098_s17  ;;  %196 = vrot.lane.b32.xlu0 %v3170_v10, %s3099_s18  ;;  %v233_v33 = vmul.f32 0.35355338, %v3170_v10 }
  0xfe   :  { %v2755_v13 = vpop.f32.mrf.mxu0 }
  0xff   :  { %v232_v14 = vmul.f32 0.35355338, %v174_v12  ;;  %v3176_v16 = vadd.f32 %v2755_v13, %v2575_v8  ;;  %v251_v13 = vld [vmem:[#allocation7 + $0x18] sm:$0xff] }
 0x100   :  { %v183_v15 = vpop.f32.mrf.mxu0 }
 0x101   :  { %208 = vrot.lane.b32.xlu1 %v3170_v10, %s3100_s19  ;;  %194 = vrot.lane.b32.xlu0 %v174_v12, %s3099_s18  ;;  %v3178_v17 = vadd.f32 %v2575_v8, %v183_v15  ;;  %v241_v52 = vmul.f32 0.35355338, %v3176_v16 }
 0x102   :  { %2760 = vmatprep.mubr.msk.f32.mxu1 %vm268_vm1, %v232_v14 }
 0x103   :  { %v240_v45 = vmul.f32 0.35355338, %v3178_v17 }
 0x105   :  { %206 = vrot.lane.b32.xlu1 %v174_v12, %s3100_s19  ;;  %200 = vrot.lane.b32.xlu0 %v174_v12, %s3098_s17 }
 0x109   :  { %214 = vrot.lane.b32.xlu1 %v3178_v17, %s3099_s18  ;;  %216 = vrot.lane.b32.xlu0 %v3176_v16, %s3099_s18 }
 0x10d   :  { %228 = vrot.lane.b32.xlu1 %v3176_v16, %s3100_s19  ;;  %222 = vrot.lane.b32.xlu0 %v3176_v16, %s3098_s17 }
 0x111   :  { %226 = vrot.lane.b32.xlu1 %v3178_v17, %s3100_s19  ;;  %220 = vrot.lane.b32.xlu0 %v3178_v17, %s3098_s17 }
 0x115   :  { %266 = vrot.lane.b32.xlu0 %v3170_v10, %s3101_s2 }
 0x119   :  { %264 = vrot.lane.b32.xlu0 %v174_v12, %s3101_s2 }
 0x16f   :  { %v3189_v18 = vpop.permute.xlu1 %202  ;;  %v197_v19 = vpop.permute.xlu0 %196 }
 0x170   :  { %356 = vrot.lane.b32.xlu1 %v197_v19, %s3101_s2  ;;  %445 = vrot.lane.b32.xlu0 %v3189_v18, %s3101_s2  ;;  %v235_v38 = vmul.f32 0.35355338, %v197_v19  ;;  %v237_v42 = vmul.f32 0.35355338, %v3189_v18 }
 0x173   :  { %v3194_v20 = vpop.permute.xlu1 %208  ;;  %v195_v21 = vpop.permute.xlu0 %194 }
 0x174   :  { %v234_v22 = vmul.f32 0.35355338, %v195_v21  ;;  %354 = vrot.lane.b32.xlu1 %v195_v21, %s3101_s2  ;;  %v239_v46 = vmul.f32 0.35355338, %v3194_v20 }
 0x176   :  { %2767 = vmatprep.mubr.msk.f32.mxu0 %vm268_vm1, %v234_v22 }
 0x177   :  { %v201_v23 = vpop.permute.xlu0 %200  ;;  %v207_v24 = vpop.permute.xlu1 %206 }
 0x178   :  { %534 = vrot.lane.b32.xlu1 %v3194_v20, %s3101_s2  ;;  %443 = vrot.lane.b32.xlu0 %v201_v23, %s3101_s2  ;;  %v236_v34 = vmul.f32 0.35355338, %v201_v23  ;;  %v238_v41 = vmul.f32 0.35355338, %v207_v24 }
 0x17b   :  { %v3201_v25 = vpop.permute.xlu0 %216  ;;  %v3206_v26 = vpop.permute.xlu1 %214 }
 0x17c   :  { %532 = vrot.lane.b32.xlu1 %v207_v24, %s3101_s2  ;;  %623 = vrot.lane.b32.xlu0 %v3176_v16, %s3101_s2  ;;  %v242_v49 = vmul.f32 0.35355338, %v3206_v26  ;;  %v243_v54 = vmul.f32 0.35355338, %v3201_v25 }
 0x17f   :  { %v3208_v27 = vpop.permute.xlu0 %222  ;;  %v3220_v29 = vpop.permute.xlu1 %228 }
 0x180   :  { %621 = vrot.lane.b32.xlu0 %v3178_v17, %s3101_s2  ;;  %712 = vrot.lane.b32.xlu1 %v3201_v25, %s3101_s2  ;;  %v245_v58 = vmul.f32 0.35355338, %v3208_v27  ;;  %v247_v61 = vmul.f32 0.35355338, %v3220_v29 }
 0x183   :  { %v3214_v28 = vpop.permute.xlu0 %220  ;;  %v3228_v31 = vpop.permute.xlu1 %226 }
 0x184   :  { %710 = vrot.lane.b32.xlu1 %v3206_v26, %s3101_s2  ;;  %801 = vrot.lane.b32.xlu0 %v3208_v27, %s3101_s2  ;;  %v244_v53 = vmul.f32 0.35355338, %v3214_v28  ;;  %v246_v57 = vmul.f32 0.35355338, %v3228_v31 }
 0x187   :  { %v267_v30 = vpop.permute.xlu0 %266 }
 0x188   :  { %890 = vrot.lane.b32.xlu1 %v3220_v29, %s3101_s2  ;;  %799 = vrot.lane.b32.xlu0 %v3214_v28, %s3101_s2 }
 0x189   :  { %2756 = vmatprep.subr.msk.mxu1 %vm268_vm1, %v267_v30 }
 0x18a   :  { %2757 = vmatpush3.xpose.msk.msra.mxu1 %vm268_vm1, %v267_v30 }
 0x18b   :  { %v265_v32 = vpop.permute.xlu0 %264 }
 0x18c   :  { %888 = vrot.lane.b32.xlu1 %v3228_v31, %s3101_s2  ;;  %1154 = vrot.lane.b32.xlu0 %v174_v12, %s3102_s20 }
 0x18d   :  { %2758 = vmatprep.subr.msk.mxu1 %vm268_vm1, %v265_v32 }
 0x18e   :  { %2759 = vmatpush3.xpose.msk.msra.mxu1 %vm268_vm1, %v265_v32 }
 0x190   :  { %1156 = vrot.lane.b32.xlu1 %v3170_v10, %s3102_s20  ;;  %1330 = vrot.lane.b32.xlu0 %v3189_v18, %s3102_s20 }
 0x191   :  { %2761 = vmatmul.mubr.msk.f32.vlgmr.msra.gmra.mxu1 %vm268_vm1, %v233_v33  ;;  %v255_v33 = vld [vmem:[#allocation7 + $0x38] sm:$0xff] }
 0x192   :  { %2774 = vmatprep.mubr.msk.f32.mxu1 %vm268_vm1, %v236_v34 }
 0x194   :  { %1243 = vrot.lane.b32.xlu1 %v197_v19, %s3102_s20  ;;  %1417 = vrot.lane.b32.xlu0 %v3194_v20, %s3102_s20  ;;  %v250_v19 = vld [vmem:[#allocation7 + $0x10] sm:$0xff] }
 0x198   :  { %1241 = vrot.lane.b32.xlu1 %v195_v21, %s3102_s20  ;;  %1504 = vrot.lane.b32.xlu0 %v3176_v16, %s3102_s20  ;;  %v253_v16 = vld [vmem:[#allocation7 + $0x28] sm:$0xff]  ;;  %v252_v21 = vld [vmem:[#allocation7 + $0x20] sm:$0xff] }
 0x19c   :  { %1328 = vrot.lane.b32.xlu1 %v201_v23, %s3102_s20 }
 0x1a0   :  { %1415 = vrot.lane.b32.xlu1 %v207_v24, %s3102_s20 }
 0x1a4   :  { %1502 = vrot.lane.b32.xlu1 %v3178_v17, %s3102_s20 }
 0x1e2   :  { %v357_v35 = vpop.permute.xlu1 %356  ;;  %v446_v36 = vpop.permute.xlu0 %445 }
 0x1e3   :  { %2763 = vmatprep.subr.msk.mxu0 %vm268_vm1, %v357_v35  ;;  %2770 = vmatprep.subr.msk.mxu1 %vm268_vm1, %v446_v36 }
 0x1e4   :  { %2764 = vmatpush3.xpose.msk.msra.mxu0 %vm268_vm1, %v357_v35  ;;  %2771 = vmatpush3.xpose.msk.msra.mxu1 %vm268_vm1, %v446_v36  ;;  %v254_v35 = vld [vmem:[#allocation7 + $0x30] sm:$0xff] }
 0x1e6   :  { %v355_v37 = vpop.permute.xlu1 %354 }
 0x1e7   :  { %2765 = vmatprep.subr.msk.mxu0 %vm268_vm1, %v355_v37 }
 0x1e8   :  { %2766 = vmatpush3.xpose.msk.msra.mxu0 %vm268_vm1, %v355_v37 }
 0x1ea   :  { %v535_v39 = vpop.permute.xlu1 %534  ;;  %v444_v40 = vpop.permute.xlu0 %443 }
 0x1eb   :  { %2768 = vmatmul.mubr.msk.f32.vlgmr.msra.gmra.mxu0 %vm268_vm1, %v235_v38  ;;  %2772 = vmatprep.subr.msk.mxu1 %vm268_vm1, %v444_v40 }
 0x1ec   :  { %2777 = vmatprep.subr.msk.mxu0 %vm268_vm1, %v535_v39  ;;  %2773 = vmatpush3.xpose.msk.msra.mxu1 %vm268_vm1, %v444_v40 }
 0x1ed   :  { %2778 = vmatpush3.xpose.msk.msra.mxu0 %vm268_vm1, %v535_v39  ;;  %2781 = vmatprep.mubr.msk.f32.mxu0 %vm268_vm1, %v238_v41  ;;  %v257_v41 = vld [vmem:[#allocation7 + $0x48] sm:$0xff] }
 0x1ee   :  { %v533_v43 = vpop.permute.xlu1 %532  ;;  %v624_v44 = vpop.permute.xlu0 %623 }
 0x1ef   :  { %2775 = vmatmul.mubr.msk.f32.vlgmr.msra.gmra.mxu1 %vm268_vm1, %v237_v42  ;;  %2779 = vmatprep.subr.msk.mxu0 %vm268_vm1, %v533_v43 }
 0x1f0   :  { %2784 = vmatprep.subr.msk.mxu1 %vm268_vm1, %v624_v44  ;;  %2788 = vmatprep.mubr.msk.f32.mxu1 %vm268_vm1, %v240_v45 }
 0x1f1   :  { %2780 = vmatpush3.xpose.msk.msra.mxu0 %vm268_vm1, %v533_v43  ;;  %2785 = vmatpush3.xpose.msk.msra.mxu1 %vm268_vm1, %v624_v44  ;;  %v256_v43 = vld [vmem:[#allocation7 + $0x40] sm:$0xff] }
 0x1f2   :  { %v713_v47 = vpop.permute.xlu1 %712  ;;  %v622_v48 = vpop.permute.xlu0 %621 }
 0x1f3   :  { %2786 = vmatprep.subr.msk.mxu1 %vm268_vm1, %v622_v48  ;;  %2791 = vmatprep.subr.msk.mxu0 %vm268_vm1, %v713_v47 }
 0x1f4   :  { %2782 = vmatmul.mubr.msk.f32.vlgmr.msra.gmra.mxu0 %vm268_vm1, %v239_v46 }
 0x1f5   :  { %2787 = vmatpush3.xpose.msk.msra.mxu1 %vm268_vm1, %v622_v48  ;;  %2792 = vmatpush3.xpose.msk.msra.mxu0 %vm268_vm1, %v713_v47 }
 0x1f6   :  { %2795 = vmatprep.mubr.msk.f32.mxu0 %vm268_vm1, %v242_v49  ;;  %v711_v50 = vpop.permute.xlu1 %710  ;;  %v802_v51 = vpop.permute.xlu0 %801  ;;  %v259_v49 = vld [vmem:[#allocation7 + $0x58] sm:$0xff] }
 0x1f7   :  { %2793 = vmatprep.subr.msk.mxu0 %vm268_vm1, %v711_v50  ;;  %2798 = vmatprep.subr.msk.mxu1 %vm268_vm1, %v802_v51 }
 0x1f8   :  { %2789 = vmatmul.mubr.msk.f32.vlgmr.msra.gmra.mxu1 %vm268_vm1, %v241_v52 }
 0x1f9   :  { %2794 = vmatpush3.xpose.msk.msra.mxu0 %vm268_vm1, %v711_v50  ;;  %2799 = vmatpush3.xpose.msk.msra.mxu1 %vm268_vm1, %v802_v51  ;;  %v258_v51 = vld [vmem:[#allocation7 + $0x50] sm:$0xff] }
 0x1fa   :  { %2802 = vmatprep.mubr.msk.f32.mxu1 %vm268_vm1, %v244_v53  ;;  %v891_v55 = vpop.permute.xlu1 %890  ;;  %v800_v56 = vpop.permute.xlu0 %799 }
 0x1fb   :  { %2800 = vmatprep.subr.msk.mxu1 %vm268_vm1, %v800_v56  ;;  %2805 = vmatprep.subr.msk.mxu0 %vm268_vm1, %v891_v55 }
 0x1fc   :  { %2796 = vmatmul.mubr.msk.f32.vlgmr.msra.gmra.mxu0 %vm268_vm1, %v243_v54 }
 0x1fd   :  { %2801 = vmatpush3.xpose.msk.msra.mxu1 %vm268_vm1, %v800_v56  ;;  %2806 = vmatpush3.xpose.msk.msra.mxu0 %vm268_vm1, %v891_v55 }
 0x1fe   :  { %2809 = vmatprep.mubr.msk.f32.mxu0 %vm268_vm1, %v246_v57  ;;  %v889_v59 = vpop.permute.xlu1 %888  ;;  %v1155_v60 = vpop.permute.xlu0 %1154  ;;  %v261_v57 = vld [vmem:[#allocation7 + $0x68] sm:$0xff] }
 0x1ff   :  { %2807 = vmatprep.subr.msk.mxu0 %vm268_vm1, %v889_v59 }
 0x200   :  { %2803 = vmatmul.mubr.msk.f32.vlgmr.msra.gmra.mxu1 %vm268_vm1, %v245_v58 }
 0x201   :  { %2808 = vmatpush3.xpose.msk.msra.mxu0 %vm268_vm1, %v889_v59  ;;  %v260_v59 = vld [vmem:[#allocation7 + $0x60] sm:$0xff] }
 0x202   :  { %v1157_v62 = vpop.permute.xlu1 %1156  ;;  %v1331_v63 = vpop.permute.xlu0 %1330 }
 0x203   :  { %2812 = vmatprep.subr.mxu1 %v1157_v62  ;;  %2826 = vmatprep.subr.mxu0 %v1331_v63 }
 0x204   :  { %2810 = vmatmul.mubr.msk.f32.vlgmr.msra.gmra.mxu0 %vm268_vm1, %v247_v61  ;;  %2813 = vmatpush3.msra.mxu1 %v1157_v62 }
 0x205   :  { %2827 = vmatpush3.msra.mxu0 %v1331_v63  ;;  %2814 = vmatprep.subr.mxu1 %v1155_v60 }
 0x206   :  { %v3302_v0 = vpop.permute.xlu1 %1243  ;;  %2815 = vmatpush3.msra.mxu1 %v1155_v60  ;;  %v3305_v1 = vpop.permute.xlu0 %1417 }
 0x207   :  { %2819 = vmatprep.subr.mxu1 %v3302_v0 }
 0x20a   :  { %v3307_v2 = vpop.permute.xlu1 %1241  ;;  %v3309_v4 = vpop.permute.xlu0 %1504 }
 0x20e   :  { %v1329_v3 = vpop.permute.xlu1 %1328 }
 0x20f   :  { %2828 = vmatprep.subr.mxu0 %v1329_v3 }
 0x210   :  { %2829 = vmatpush3.msra.mxu0 %v1329_v3 }
 0x211   :  { %2840 = vmatprep.subr.mxu0 %v3309_v4 }
 0x251   :  { %v2762_v6 = vpop.f32.mrf.mxu1 }
 0x252   :  { %v3312_v8 = vadd.f32 %v2762_v6, %v249_v5  ;;  %v263_v5 = vld [vmem:[#allocation7 + $0x78] sm:$0xff] }
 0x253   :  { %v345_v9 = vpop.f32.mrf.mxu1 }
 0x254   :  { %v3314_v10 = vadd.f32 %v345_v9, %v248_v7  ;;  %v981_v11 = vsel %vm977_vm2, %v3312_v8, -inf }
 0x255   :  { %982 = vmax.xlane.f32.xlu1 %v981_v11 }
 0x256   :  { %v978_v12 = vsel %vm977_vm2, %v3314_v10, -inf }
 0x257   :  { %979 = vmax.xlane.f32.xlu0 %v978_v12 }
 0x2ab   :  { %v2769_v14 = vpop.f32.mrf.mxu0 }
 0x2ac   :  { %v3320_v15 = vadd.f32 %v2769_v14, %v251_v13  ;;  %v3374_v13 = vpop.permute.xlu1 %1415 }
 0x2ad   :  { %v434_v18 = vpop.f32.mrf.mxu0 }
 0x2ae   :  { %v987_v17 = vsel %vm977_vm2, %v3320_v15, -inf  ;;  %v3326_v24 = vadd.f32 %v434_v18, %v250_v19 }
 0x2af   :  { %v2776_v20 = vpop.f32.mrf.mxu1  ;;  %988 = vmax.xlane.f32.xlu0 %v987_v17 }
 0x2b0   :  { %v3324_v22 = vadd.f32 %v2776_v20, %v253_v16  ;;  %v984_v39 = vsel %vm977_vm2, %v3326_v24, -inf  ;;  %v3378_v14 = vpop.permute.xlu1 %1502  ;;  %v262_v20 = vld [vmem:[#allocation7 + $0x70] sm:$0xff] }
 0x2b1   :  { %v523_v23 = vpop.f32.mrf.mxu1 }
 0x2b2   :  { %v3328_v30 = vadd.f32 %v523_v23, %v252_v21  ;;  %v993_v32 = vsel %vm977_vm2, %v3324_v22, -inf }
 0x2b3   :  { %994 = vmax.xlane.f32.xlu0 %v993_v32 }
 0x2b4   :  { %v2783_v34 = vpop.f32.mrf.mxu0  ;;  %v990_v36 = vsel %vm977_vm2, %v3328_v30, -inf }
 0x2b5   :  { %991 = vmax.xlane.f32.xlu1 %v990_v36  ;;  %v3334_v37 = vadd.f32 %v2783_v34, %v255_v33 }
 0x2b6   :  { %v612_v38 = vpop.f32.mrf.mxu0 }
 0x2b7   :  { %v3338_v40 = vadd.f32 %v612_v38, %v254_v35  ;;  %985 = vmax.xlane.f32.xlu0 %v984_v39  ;;  %v999_v47 = vsel %vm977_vm2, %v3334_v37, -inf }
 0x2b8   :  { %v2790_v42 = vpop.f32.mrf.mxu1 }
 0x2b9   :  { %v996_v44 = vsel %vm977_vm2, %v3338_v40, -inf  ;;  %v3342_v45 = vadd.f32 %v2790_v42, %v257_v41 }
 0x2ba   :  { %v701_v46 = vpop.f32.mrf.mxu1  ;;  %997 = vmax.xlane.f32.xlu1 %v996_v44 }
 0x2bb   :  { %v3346_v48 = vadd.f32 %v701_v46, %v256_v43  ;;  %1000 = vmax.xlane.f32.xlu0 %v999_v47  ;;  %v1005_v55 = vsel %vm977_vm2, %v3342_v45, -inf }
 0x2bc   :  { %v2797_v50 = vpop.f32.mrf.mxu0 }
 0x2bd   :  { %v1002_v52 = vsel %vm977_vm2, %v3346_v48, -inf  ;;  %v3350_v53 = vadd.f32 %v2797_v50, %v259_v49 }
 0x2be   :  { %v790_v54 = vpop.f32.mrf.mxu0  ;;  %1003 = vmax.xlane.f32.xlu1 %v1002_v52 }
 0x2bf   :  { %v3354_v56 = vadd.f32 %v790_v54, %v258_v51  ;;  %1006 = vmax.xlane.f32.xlu0 %v1005_v55  ;;  %v1011_v63 = vsel %vm977_vm2, %v3350_v53, -inf }
 0x2c0   :  { %v2804_v58 = vpop.f32.mrf.mxu1 }
 0x2c1   :  { %v1008_v60 = vsel %vm977_vm2, %v3354_v56, -inf  ;;  %v3358_v61 = vadd.f32 %v2804_v58, %v261_v57 }
 0x2c2   :  { %v879_v62 = vpop.f32.mrf.mxu1  ;;  %1009 = vmax.xlane.f32.xlu1 %v1008_v60 }
 0x2c3   :  { %v3362_v3 = vadd.f32 %v879_v62, %v260_v59  ;;  %1012 = vmax.xlane.f32.xlu0 %v1011_v63  ;;  %v1017_v11 = vsel %vm977_vm2, %v3358_v61, -inf }
 0x2c4   :  { %v2811_v6 = vpop.f32.mrf.mxu0 }
 0x2c5   :  { %v1014_v7 = vsel %vm977_vm2, %v3362_v3, -inf  ;;  %v3366_v9 = vadd.f32 %v2811_v6, %v263_v5 }
 0x2c6   :  { %1015 = vmax.xlane.f32.xlu1 %v1014_v7  ;;  %v968_v19 = vpop.f32.mrf.mxu0 }
 0x2c7   :  { %1018 = vmax.xlane.f32.xlu0 %v1017_v11  ;;  %v1023_v12 = vsel %vm977_vm2, %v3366_v9, -inf  ;;  %v3383_v21 = vadd.f32 %v968_v19, %v262_v20 }
 0x2cb   :  { %1024 = vmax.xlane.f32.xlu0 %v1023_v12 }
 0x2d7   :  { %1589 = vrot.lane.b32.xlu1 %v3206_v26, %s3102_s20  ;;  %v1020_v26 = vsel %vm977_vm2, %v3383_v21, -inf }
 0x2de   :  { %v983_v16 = vpop.xlane.xlu1 %982 }
 0x2df   :  { %v1027_v17 = vsub.f32 %v3312_v8, %v983_v16 }
 0x2e1   :  { %1591 = vrot.lane.b32.xlu0 %v3201_v25, %s3102_s20  ;;  %v1044_v18 = vmul.f32 1.442695, %v1027_v17 }
 0x2e3   :  { %2920 = vpow2.f32 %v1044_v18 }
 0x2e5   :  { %1678 = vrot.lane.b32.xlu0 %v3208_v27, %s3102_s20  ;;  %v980_v27 = vpop.xlane.xlu0 %979 }
 0x2e6   :  { %v1026_v8 = vsub.f32 %v3314_v10, %v980_v27 }
 0x2e8   :  { %v1042_v32 = vmul.f32 1.442695, %v1026_v8 }
 0x2ea   :  { %2922 = vpow2.f32 %v1042_v32 }
 0x2f0   :  { %v3387_v23 = vpop.eup %2920 }
 0x2f1   :  { %v1077_v25 = vsel %vm977_vm2, %v3387_v23, 0.0 }
 0x2f7   :  { %v3394_v33 = vpop.eup %2922 }
 0x2f8   :  { %v1074_v34 = vsel %vm977_vm2, %v3394_v33, 0.0 }
 0x2fb   :  { %1021 = vmax.xlane.f32.xlu1 %v1020_v26 }
 0x304   :  { %1078 = vadd.xlane.f32.xlu0 %v1077_v25 }
 0x30c   :  { %1676 = vrot.lane.b32.xlu1 %v3214_v28, %s3102_s20 }
 0x330   :  { %1075 = vadd.xlane.f32.xlu1 %v1074_v34 }
 0x338   :  { %v989_v35 = vpop.xlane.xlu0 %988 }
 0x339   :  { %v1029_v36 = vsub.f32 %v3320_v15, %v989_v35 }
 0x33b   :  { %v1048_v38 = vmul.f32 1.442695, %v1029_v36 }
 0x33c   :  { %v995_v39 = vpop.xlane.xlu0 %994 }
 0x33d   :  { %2924 = vpow2.f32 %v1048_v38  ;;  %v1031_v41 = vsub.f32 %v3324_v22, %v995_v39 }
 0x33e   :  { %v992_v28 = vpop.xlane.xlu1 %991 }
 0x33f   :  { %v1052_v42 = vmul.f32 1.442695, %v1031_v41  ;;  %v1030_v10 = vsub.f32 %v3328_v30, %v992_v28 }
 0x340   :  { %v986_v43 = vpop.xlane.xlu0 %985 }
 0x341   :  { %2926 = vpow2.f32 %v1052_v42  ;;  %v1028_v44 = vsub.f32 %v3326_v24, %v986_v43  ;;  %v1050_v46 = vmul.f32 1.442695, %v1030_v10 }
 0x343   :  { %v1046_v47 = vmul.f32 1.442695, %v1028_v44  ;;  %v998_v49 = vpop.xlane.xlu1 %997 }
 0x344   :  { %v1032_v50 = vsub.f32 %v3338_v40, %v998_v49  ;;  %v1001_v51 = vpop.xlane.xlu0 %1000 }
 0x345   :  { %2928 = vpow2.f32 %v1046_v47  ;;  %v1033_v15 = vsub.f32 %v3334_v37, %v1001_v51 }
 0x346   :  { %2930 = vpow2.f32 %v1050_v46  ;;  %v1054_v52 = vmul.f32 1.442695, %v1032_v50 }
 0x347   :  { %v1056_v22 = vmul.f32 1.442695, %v1033_v15  ;;  %v1004_v54 = vpop.xlane.xlu1 %1003 }
 0x348   :  { %v1034_v55 = vsub.f32 %v3346_v48, %v1004_v54  ;;  %v1007_v30 = vpop.xlane.xlu0 %1006 }
 0x349   :  { %2932 = vpow2.f32 %v1056_v22  ;;  %v1035_v57 = vsub.f32 %v3342_v45, %v1007_v30 }
 0x34a   :  { %v3406_v24 = vpop.eup %2924  ;;  %2934 = vpow2.f32 %v1054_v52  ;;  %v1058_v58 = vmul.f32 1.442695, %v1034_v55 }
 0x34b   :  { %v1060_v59 = vmul.f32 1.442695, %v1035_v57  ;;  %v1010_v40 = vpop.xlane.xlu1 %1009  ;;  %v1083_v60 = vsel %vm977_vm2, %v3406_v24, 0.0 }
 0x34c   :  { %v1036_v37 = vsub.f32 %v3354_v56, %v1010_v40  ;;  %1084 = vadd.xlane.f32.xlu0 %v1083_v60  ;;  %v1013_v62 = vpop.xlane.xlu0 %1012 }
 0x34d   :  { %2936 = vpow2.f32 %v1060_v59  ;;  %v1037_v48 = vsub.f32 %v3350_v53, %v1013_v62 }
 0x34e   :  { %v3412_v63 = vpop.eup %2926  ;;  %2938 = vpow2.f32 %v1058_v58  ;;  %v1062_v45 = vmul.f32 1.442695, %v1036_v37 }
 0x34f   :  { %v1064_v5 = vmul.f32 1.442695, %v1037_v48  ;;  %v1016_v6 = vpop.xlane.xlu1 %1015  ;;  %v1089_v7 = vsel %vm977_vm2, %v3412_v63, 0.0 }
 0x350   :  { %v1038_v11 = vsub.f32 %v3362_v3, %v1016_v6  ;;  %1090 = vadd.xlane.f32.xlu0 %v1089_v7  ;;  %v1019_v12 = vpop.xlane.xlu0 %1018 }
 0x351   :  { %2940 = vpow2.f32 %v1064_v5  ;;  %v1039_v56 = vsub.f32 %v3358_v61, %v1019_v12 }
 0x352   :  { %v3418_v16 = vpop.eup %2928  ;;  %2942 = vpow2.f32 %v1062_v45  ;;  %v1066_v53 = vmul.f32 1.442695, %v1038_v11 }
 0x353   :  { %v1068_v17 = vmul.f32 1.442695, %v1039_v56  ;;  %v1080_v18 = vsel %vm977_vm2, %v3418_v16, 0.0  ;;  %v3422_v19 = vpop.eup %2930  ;;  %v3465_v49 = vpop.permute.xlu1 %1589 }
 0x354   :  { %1081 = vadd.xlane.f32.xlu1 %v1080_v18  ;;  %v1025_v20 = vpop.xlane.xlu0 %1024  ;;  %v1086_v61 = vsel %vm977_vm2, %v3422_v19, 0.0 }
 0x355   :  { %2944 = vpow2.f32 %v1068_v17  ;;  %v1041_v3 = vsub.f32 %v3366_v9, %v1025_v20 }
 0x356   :  { %v3425_v26 = vpop.eup %2932  ;;  %2946 = vpow2.f32 %v1066_v53 }
 0x357   :  { %v1072_v25 = vmul.f32 1.442695, %v1041_v3  ;;  %v1095_v27 = vsel %vm977_vm2, %v3425_v26, 0.0  ;;  %v3431_v8 = vpop.eup %2934 }
 0x358   :  { %1087 = vadd.xlane.f32.xlu1 %v1086_v61  ;;  %1096 = vadd.xlane.f32.xlu0 %v1095_v27  ;;  %v1092_v9 = vsel %vm977_vm2, %v3431_v8, 0.0  ;;  %v3474_v54 = vpop.permute.xlu0 %1591 }
 0x359   :  { %2948 = vpow2.f32 %v1072_v25 }
 0x35a   :  { %v3433_v32 = vpop.eup %2936 }
 0x35b   :  { %v1101_v34 = vsel %vm977_vm2, %v3433_v32, 0.0  ;;  %v3439_v35 = vpop.eup %2938 }
 0x35c   :  { %1093 = vadd.xlane.f32.xlu1 %v1092_v9  ;;  %1102 = vadd.xlane.f32.xlu0 %v1101_v34  ;;  %v1098_v38 = vsel %vm977_vm2, %v3439_v35, 0.0  ;;  %v3476_v55 = vpop.permute.xlu0 %1678 }
 0x35e   :  { %v3441_v36 = vpop.eup %2940 }
 0x35f   :  { %v1107_v39 = vsel %vm977_vm2, %v3441_v36, 0.0  ;;  %v3447_v41 = vpop.eup %2942 }
 0x360   :  { %1099 = vadd.xlane.f32.xlu1 %v1098_v38  ;;  %1108 = vadd.xlane.f32.xlu0 %v1107_v39  ;;  %v1104_v42 = vsel %vm977_vm2, %v3447_v41, 0.0  ;;  %v1850_v38 = vld [vmem:[#allocation8] sm:$0xff] }
 0x362   :  { %v3449_v28 = vpop.eup %2944 }
 0x363   :  { %v1113_v10 = vsel %vm977_vm2, %v3449_v28, 0.0  ;;  %v3455_v43 = vpop.eup %2946 }
 0x364   :  { %1105 = vadd.xlane.f32.xlu1 %v1104_v42  ;;  %1114 = vadd.xlane.f32.xlu0 %v1113_v10  ;;  %v1110_v46 = vsel %vm977_vm2, %v3455_v43, 0.0 }
 0x366   :  { %v3457_v44 = vpop.eup %2948 }
 0x367   :  { %v1119_v47 = vsel %vm977_vm2, %v3457_v44, 0.0 }
 0x368   :  { %1111 = vadd.xlane.f32.xlu1 %v1110_v46  ;;  %1120 = vadd.xlane.f32.xlu0 %v1119_v47  ;;  %v1852_v46 = vld [vmem:[#allocation8 + $0x10] sm:$0xff]  ;;  %v1853_v47 = vld [vmem:[#allocation8 + $0x18] sm:$0xff] }
 0x37e   :  { %1765 = vrot.lane.b32.xlu0 %v3220_v29, %s3102_s20 }
 0x384   :  { %v1022_v50 = vpop.xlane.xlu1 %1021 }
 0x385   :  { %v1040_v51 = vsub.f32 %v3383_v21, %v1022_v50 }
 0x387   :  { %v1070_v15 = vmul.f32 1.442695, %v1040_v51 }
 0x388   :  { %v3478_v29 = vpop.permute.xlu1 %1676 }
 0x389   :  { %2950 = vpow2.f32 %v1070_v15 }
 0x38d   :  { %v1079_v30 = vpop.xlane.xlu0 %1078 }
 0x38e   :  { %2952 = vrcp.f32 %v1079_v30 }
 0x396   :  { %v3468_v52 = vpop.eup %2950 }
 0x397   :  { %v1116_v22 = vsel %vm977_vm2, %v3468_v52, 0.0 }
 0x398   :  { %1117 = vadd.xlane.f32.xlu1 %v1116_v22 }
 0x39b   :  { %v2953_v57 = vpop.eup %2952 }
 0x39c   :  { %v1139_v40 = vmul.f32 %v2953_v57, %v3387_v23 }
 0x3a9   :  { %1763 = vrot.lane.b32.xlu1 %v3228_v31, %s3102_s20 }
 0x3b9   :  { %v1076_v21 = vpop.xlane.xlu1 %1075 }
 0x3ba   :  { %2954 = vrcp.f32 %v1076_v21 }
 0x3c7   :  { %v2955_v58 = vpop.eup %2954 }
 0x3c8   :  { %v1138_v59 = vmul.f32 %v2955_v58, %v3394_v33 }
 0x3ca   :  { %2816 = vmatprep.mubr.msk.f32.mxu1 %vm977_vm2, %v1138_v59 }
 0x3cb   :  { %2817 = vmatmul.mubr.msk.f32.vlgmr.msra.gmra.mxu1 %vm977_vm2, %v1139_v40 }
 0x3cc   :  { %2820 = vmatpush3.msra.mxu1 %v3302_v0 }
 0x3cd   :  { %2821 = vmatprep.subr.mxu1 %v3307_v2 }
 0x3ce   :  { %2822 = vmatpush3.msra.mxu1 %v3307_v2 }
 0x3cf   :  { %2833 = vmatprep.subr.mxu1 %v3305_v1 }
 0x3d5   :  { %v1085_v31 = vpop.xlane.xlu0 %1084 }
 0x3d6   :  { %2956 = vrcp.f32 %v1085_v31 }
 0x3d9   :  { %v1091_v60 = vpop.xlane.xlu0 %1090 }
 0x3dd   :  { %v1082_v37 = vpop.xlane.xlu1 %1081 }
 0x3de   :  { %2958 = vrcp.f32 %v1082_v37 }
 0x3df   :  { %2960 = vrcp.f32 %v1091_v60 }
 0x3e1   :  { %v1088_v33 = vpop.xlane.xlu1 %1087  ;;  %v1097_v23 = vpop.xlane.xlu0 %1096 }
 0x3e2   :  { %2962 = vrcp.f32 %v1088_v33 }
 0x3e3   :  { %2964 = vrcp.f32 %v1097_v23  ;;  %v2957_v5 = vpop.eup %2956 }
 0x3e4   :  { %v1141_v11 = vmul.f32 %v2957_v5, %v3406_v24 }
 0x3e5   :  { %v1094_v62 = vpop.xlane.xlu1 %1093  ;;  %v1103_v48 = vpop.xlane.xlu0 %1102 }
 0x3e6   :  { %2966 = vrcp.f32 %v1094_v62 }
 0x3e7   :  { %2968 = vrcp.f32 %v1103_v48 }
 0x3e9   :  { %v1100_v0 = vpop.xlane.xlu1 %1099  ;;  %v1109_v45 = vpop.xlane.xlu0 %1108 }
 0x3ea   :  { %2970 = vrcp.f32 %v1100_v0 }
 0x3eb   :  { %v2959_v2 = vpop.eup %2958  ;;  %2972 = vrcp.f32 %v1109_v45 }
 0x3ec   :  { %v1140_v6 = vmul.f32 %v2959_v2, %v3418_v16  ;;  %v2961_v12 = vpop.eup %2960 }
 0x3ed   :  { %v1106_v7 = vpop.xlane.xlu1 %1105  ;;  %v1115_v56 = vpop.xlane.xlu0 %1114  ;;  %v1143_v18 = vmul.f32 %v2961_v12, %v3412_v63 }
 0x3ee   :  { %2974 = vrcp.f32 %v1106_v7  ;;  %2823 = vmatprep.mubr.msk.f32.mxu1 %vm977_vm2, %v1140_v6 }
 0x3ef   :  { %v2963_v53 = vpop.eup %2962  ;;  %2824 = vmatmul.mubr.msk.f32.vlgmr.msra.gmra.mxu1 %vm977_vm2, %v1141_v11  ;;  %2976 = vrcp.f32 %v1115_v56 }
 0x3f0   :  { %2834 = vmatpush3.msra.mxu1 %v3305_v1  ;;  %v1142_v17 = vmul.f32 %v2963_v53, %v3422_v19  ;;  %v2965_v20 = vpop.eup %2964 }
 0x3f1   :  { %2835 = vmatprep.subr.mxu1 %v3374_v13  ;;  %v1112_v16 = vpop.xlane.xlu1 %1111  ;;  %v1121_v1 = vpop.xlane.xlu0 %1120  ;;  %v1145_v63 = vmul.f32 %v2965_v20, %v3425_v26 }
 0x3f2   :  { %2978 = vrcp.f32 %v1112_v16  ;;  %2836 = vmatpush3.msra.mxu1 %v3374_v13  ;;  %2830 = vmatprep.mubr.msk.f32.mxu0 %vm977_vm2, %v1142_v17  ;;  %v2636_v17 = vld [vmem:[%s3580_s5] ss:$0 sm:$0xff]  ;;  %s3103_s5 = smov [#allocation10]  }
 0x3f3   :  { %v2967_v24 = vpop.eup %2966  ;;  %2847 = vmatprep.subr.mxu1 %v3474_v54  ;;  %2831 = vmatmul.mubr.msk.f32.vlgmr.msra.gmra.mxu0 %vm977_vm2, %v1143_v18  ;;  %2980 = vrcp.f32 %v1121_v1  ;;  %s2561_s23 = sshll.u32 %s3103_s5, 4  ;;  %s2562_s23 = int_to_ptr.vmem [resolvable:$true] %s2561_s23 }
 0x3f4   :  { %2841 = vmatpush3.msra.mxu0 %v3309_v4  ;;  %v1144_v19 = vmul.f32 %v2967_v24, %v3431_v8  ;;  %v2969_v3 = vpop.eup %2968  ;;  %s3064_s24 = scalar_lea.vmem %s2562_s23, 512  ;;  %p3069_p7 = scmp.lt.s32.totalorder %s2562_s23, %s2562_s23 }
 0x3f5   :  { %2842 = vmatprep.subr.mxu0 %v3378_v14  ;;  %v1147_v25 = vmul.f32 %v2969_v3, %v3433_v32  ;;  %v1766_v26 = vpop.permute.xlu0 %1765  ;;  %p3065_p6 = scmp.ne.s32.totalorder %s2562_s23, %s3064_s24  ;;  %p3070_p8 = scmp.lt.s32.totalorder %s3064_s24, %s3064_s24 }
 0x3f6   :  { %2843 = vmatpush3.msra.mxu0 %v3378_v14  ;;  %2837 = vmatprep.mubr.msk.f32.mxu1 %vm977_vm2, %v1144_v19 }
 0x3f7   :  { %v2971_v13 = vpop.eup %2970  ;;  %2854 = vmatprep.subr.mxu0 %v3476_v55  ;;  %2838 = vmatmul.mubr.msk.f32.vlgmr.msra.gmra.mxu1 %vm977_vm2, %v1145_v63  ;;  %p3071_p9 = por %p3070_p8, %p3069_p7 }
 0x3f8   :  { %2848 = vmatpush3.msra.mxu1 %v3474_v54  ;;  %v1146_v4 = vmul.f32 %v2971_v13, %v3439_v35  ;;  %v2973_v61 = vpop.eup %2972 }
 0x3f9   :  { %2849 = vmatprep.subr.mxu1 %v3465_v49  ;;  %v1149_v8 = vmul.f32 %v2973_v61, %v3441_v36  ;;  %p3072_p10 = pnand %p3071_p9, %p3065_p6 }
 0x3fa   :  { %2850 = vmatpush3.msra.mxu1 %v3465_v49  ;;  %2844 = vmatprep.mubr.msk.f32.mxu0 %vm977_vm2, %v1146_v4 }
 0x3fb   :  { %v2975_v14 = vpop.eup %2974  ;;  %2861 = vmatprep.subr.mxu1 %v1766_v26  ;;  %2845 = vmatmul.mubr.msk.f32.vlgmr.msra.gmra.mxu0 %vm977_vm2, %v1147_v25 }
 0x3fc   :  { %2855 = vmatpush3.msra.mxu0 %v3476_v55  ;;  %v1148_v27 = vmul.f32 %v2975_v14, %v3447_v41  ;;  %v2977_v9 = vpop.eup %2976 }
 0x3fd   :  { %2856 = vmatprep.subr.mxu0 %v3478_v29  ;;  %v1151_v35 = vmul.f32 %v2977_v9, %v3449_v28  ;;  %v1851_v28 = vld [vmem:[#allocation8 + $0x8] sm:$0xff] }
 0x3fe   :  { %2857 = vmatpush3.msra.mxu0 %v3478_v29  ;;  %2851 = vmatprep.mubr.msk.f32.mxu1 %vm977_vm2, %v1148_v27 }
 0x3ff   :  { %v2979_v32 = vpop.eup %2978  ;;  %2852 = vmatmul.mubr.msk.f32.vlgmr.msra.gmra.mxu1 %vm977_vm2, %v1149_v8  ;;  %2868 = vmatprep.subr.mxu0 %v1850_v38 }
 0x400   :  { %2862 = vmatpush3.msra.mxu1 %v1766_v26  ;;  %v1150_v34 = vmul.f32 %v2979_v32, %v3455_v43  ;;  %v2981_v41 = vpop.eup %2980 }
 0x401   :  { %v1153_v43 = vmul.f32 %v2981_v41, %v3457_v44 }
 0x402   :  { %2858 = vmatprep.mubr.msk.f32.mxu0 %vm977_vm2, %v1150_v34 }
 0x403   :  { %2859 = vmatmul.mubr.msk.f32.vlgmr.msra.gmra.mxu0 %vm977_vm2, %v1151_v35 }
 0x404   :  { %2869 = vmatpush3.msra.mxu0 %v1850_v38 }
 0x405   :  { %2878 = vmatprep.subr.mxu0 %v1852_v46 }
 0x421   :  { %v1118_v36 = vpop.xlane.xlu1 %1117 }
 0x422   :  { %2982 = vrcp.f32 %v1118_v36 }
 0x425   :  { %v1764_v39 = vpop.permute.xlu1 %1763 }
 0x426   :  { %2863 = vmatprep.subr.mxu1 %v1764_v39 }
 0x427   :  { %2864 = vmatpush3.msra.mxu1 %v1764_v39 }
 0x428   :  { %2873 = vmatprep.subr.mxu1 %v1851_v28 }
 0x42f   :  { %v2983_v42 = vpop.eup %2982 }
 0x430   :  { %v1152_v10 = vmul.f32 %v2983_v42, %v3468_v52 }
 0x432   :  { %2865 = vmatprep.mubr.msk.f32.mxu1 %vm977_vm2, %v1152_v10 }
 0x433   :  { %2866 = vmatmul.mubr.msk.f32.vlgmr.msra.gmra.mxu1 %vm977_vm2, %v1153_v43 }
 0x434   :  { %2874 = vmatpush3.msra.mxu1 %v1851_v28 }
 0x435   :  { %2883 = vmatprep.subr.mxu1 %v1853_v47 }
 0x48b   :  { %v2818_v49 = vpop.f32.mrf.mxu1 }
 0x48d   :  { %v1232_v50 = vpop.f32.mrf.mxu1 }
 0x48e   :  { %2870 = vmatprep.mubr.msk.f32.mxu0 %vm268_vm1, %v1232_v50 }
 0x48f   :  { %2871 = vmatmul.mubr.msk.f32.vlgmr.msra.gmra.mxu0 %vm268_vm1, %v2818_v49 }
 0x490   :  { %2879 = vmatpush3.msra.mxu0 %v1852_v46 }
 0x491   :  { %2888 = vmatprep.subr.mxu0 %v1850_v38 }
 0x4af   :  { %v2825_v44 = vpop.f32.mrf.mxu1 }
 0x4b1   :  { %v1319_v51 = vpop.f32.mrf.mxu1 }
 0x4b2   :  { %2875 = vmatprep.mubr.msk.f32.mxu1 %vm268_vm1, %v1319_v51 }
 0x4b3   :  { %v2832_v15 = vpop.f32.mrf.mxu0  ;;  %2876 = vmatmul.mubr.msk.f32.vlgmr.msra.gmra.mxu1 %vm268_vm1, %v2825_v44 }
 0x4b4   :  { %2884 = vmatpush3.msra.mxu1 %v1853_v47 }
 0x4b5   :  { %v1406_v52 = vpop.f32.mrf.mxu0  ;;  %2893 = vmatprep.subr.mxu1 %v1851_v28 }
 0x4b6   :  { %2880 = vmatprep.mubr.msk.f32.mxu0 %vm268_vm1, %v1406_v52 }
 0x4b7   :  { %v2839_v22 = vpop.f32.mrf.mxu1  ;;  %2881 = vmatmul.mubr.msk.f32.vlgmr.msra.gmra.mxu0 %vm268_vm1, %v2832_v15 }
 0x4b8   :  { %2889 = vmatpush3.msra.mxu0 %v1850_v38 }
 0x4b9   :  { %v1493_v54 = vpop.f32.mrf.mxu1  ;;  %2898 = vmatprep.subr.mxu0 %v1852_v46 }
 0x4ba   :  { %2885 = vmatprep.mubr.msk.f32.mxu1 %vm268_vm1, %v1493_v54 }
 0x4bb   :  { %v2846_v55 = vpop.f32.mrf.mxu0  ;;  %2886 = vmatmul.mubr.msk.f32.vlgmr.msra.gmra.mxu1 %vm268_vm1, %v2839_v22 }
 0x4bc   :  { %2894 = vmatpush3.msra.mxu1 %v1851_v28 }
 0x4bd   :  { %v1580_v29 = vpop.f32.mrf.mxu0  ;;  %2903 = vmatprep.subr.mxu1 %v1853_v47 }
 0x4be   :  { %2890 = vmatprep.mubr.msk.f32.mxu0 %vm268_vm1, %v1580_v29 }
 0x4bf   :  { %v2853_v30 = vpop.f32.mrf.mxu1  ;;  %2891 = vmatmul.mubr.msk.f32.vlgmr.msra.gmra.mxu0 %vm268_vm1, %v2846_v55 }
 0x4c0   :  { %2899 = vmatpush3.msra.mxu0 %v1852_v46 }
 0x4c1   :  { %v1667_v21 = vpop.f32.mrf.mxu1 }
 0x4c2   :  { %2895 = vmatprep.mubr.msk.f32.mxu1 %vm268_vm1, %v1667_v21 }
 0x4c3   :  { %v2860_v57 = vpop.f32.mrf.mxu0  ;;  %2896 = vmatmul.mubr.msk.f32.vlgmr.msra.gmra.mxu1 %vm268_vm1, %v2853_v30 }
 0x4c4   :  { %2904 = vmatpush3.msra.mxu1 %v1853_v47 }
 0x4c5   :  { %v1754_v58 = vpop.f32.mrf.mxu0 }
 0x4c6   :  { %2900 = vmatprep.mubr.msk.f32.mxu0 %vm268_vm1, %v1754_v58 }
 0x4c7   :  { %2901 = vmatmul.mubr.msk.f32.vlgmr.msra.gmra.mxu0 %vm268_vm1, %v2860_v57 }
 0x4f3   :  { %v2867_v59 = vpop.f32.mrf.mxu1 }
 0x4f5   :  { %v1841_v40 = vpop.f32.mrf.mxu1 }
 0x4f6   :  { %2905 = vmatprep.mubr.msk.f32.mxu1 %vm268_vm1, %v1841_v40 }
 0x4f7   :  { %2906 = vmatmul.mubr.msk.f32.vlgmr.msra.gmra.mxu1 %vm268_vm1, %v2867_v59 }
 0x54f   :  { %v2872_v31 = vpop.f32.mrf.mxu0 }
 0x550   :  { %v2185_v48 = vsel %vm94_vm0, %v2872_v31, 0.0 }
 0x551   :  { %v1926_v37 = vpop.f32.mrf.mxu0 }
 0x552   :  { %v2178_v6 = vsel %vm94_vm0, %v1926_v37, 0.0 }
 0x573   :  { %v2877_v60 = vpop.f32.mrf.mxu1 }
 0x574   :  { %v2186_v23 = vsel %vm94_vm0, %v2877_v60, 0.0 }
 0x575   :  { %v2007_v33 = vpop.f32.mrf.mxu1  ;;  %v2187_v5 = vadd.f32 %v2186_v23, %v2185_v48 }
 0x576   :  { %v2179_v0 = vsel %vm94_vm0, %v2007_v33, 0.0 }
 0x577   :  { %v2882_v62 = vpop.f32.mrf.mxu0  ;;  %v2180_v11 = vadd.f32 %v2179_v0, %v2178_v6 }
 0x578   :  { %v2188_v45 = vsel %vm94_vm0, %v2882_v62, 0.0 }
 0x579   :  { %v2088_v2 = vpop.f32.mrf.mxu0  ;;  %v2189_v12 = vadd.f32 %v2188_v45, %v2187_v5 }
 0x57a   :  { %v2181_v7 = vsel %vm94_vm0, %v2088_v2, 0.0 }
 0x57b   :  { %v2887_v56 = vpop.f32.mrf.mxu1  ;;  %v2182_v16 = vadd.f32 %v2181_v7, %v2180_v11 }
 0x57c   :  { %v2190_v53 = vsel %vm94_vm0, %v2887_v56, 0.0 }
 0x57d   :  { %v2191_v18 = vadd.f32 %v2190_v53, %v2189_v12  ;;  %v2169_v20 = vpop.f32.mrf.mxu1 }
 0x57e   :  { %v2183_v24 = vsel %vm94_vm0, %v2169_v20, 0.0 }
 0x57f   :  { %v2200_v1 = vadd.f32 %v2636_v17, %v2191_v18  ;;  %v2184_v19 = vadd.f32 %v2183_v24, %v2182_v16  ;;  %v2892_v3 = vpop.f32.mrf.mxu0 }
 0x580   :  { %v2538_v27 = vsel %vm94_vm0, %v2892_v3, 0.0 }
 0x581   :  { %2202 = vst.msk [vmem:[#allocation10 + $0x8] sm:$0xff] %vm94_vm0, %v2200_v1  ;;  %v2199_v63 = vadd.f32 %v2636_v17, %v2184_v19  ;;  %v2279_v13 = vpop.f32.mrf.mxu0 }
 0x582   :  { %v2531_v34 = vsel %vm94_vm0, %v2279_v13, 0.0 }
 0x583   :  { %2201 = vst.msk [vmem:[#allocation10] sm:$0xff] %vm94_vm0, %v2199_v63  ;;  %v2897_v4 = vpop.f32.mrf.mxu1 }
 0x584   :  { %v2539_v26 = vsel %vm94_vm0, %v2897_v4, 0.0 }
 0x585   :  { %v2360_v61 = vpop.f32.mrf.mxu1  ;;  %v2540_v32 = vadd.f32 %v2539_v26, %v2538_v27 }
 0x586   :  { %v2532_v8 = vsel %vm94_vm0, %v2360_v61, 0.0 }
 0x587   :  { %v2902_v25 = vpop.f32.mrf.mxu0  ;;  %v2533_v38 = vadd.f32 %v2532_v8, %v2531_v34 }
 0x588   :  { %v2541_v9 = vsel %vm94_vm0, %v2902_v25, 0.0 }
 0x589   :  { %v2441_v14 = vpop.f32.mrf.mxu0  ;;  %v2542_v36 = vadd.f32 %v2541_v9, %v2540_v32 }
 0x58a   :  { %v2534_v35 = vsel %vm94_vm0, %v2441_v14, 0.0 }
 0x58b   :  { %v2535_v42 = vadd.f32 %v2534_v35, %v2533_v38 }
 0x5b7   :  { %v2907_v39 = vpop.f32.mrf.mxu1 }
 0x5b8   :  { %v2543_v41 = vsel %vm94_vm0, %v2907_v39, 0.0 }
 0x5b9   :  { %v2544_v10 = vadd.f32 %v2543_v41, %v2542_v36  ;;  %v2522_v43 = vpop.f32.mrf.mxu1 }
 0x5ba   :  { %v2536_v28 = vsel %vm94_vm0, %v2522_v43, 0.0 }
 0x5bb   :  { %v2553_v46 = vadd.f32 %v2636_v17, %v2544_v10  ;;  %v2537_v47 = vadd.f32 %v2536_v28, %v2535_v42 }
 0x5bd   :  { %2555 = vst.msk [vmem:[#allocation10 + $0x18] sm:$0xff] %vm94_vm0, %v2553_v46  ;;  %v2552_v49 = vadd.f32 %v2636_v17, %v2537_v47 }
 0x5bf   :  { %2554 = vst.msk [vmem:[#allocation10 + $0x10] sm:$0xff] %vm94_vm0, %v2552_v49 }
 0x5c0   :  { %3075 = shalt.err (!%p3072_p10)
}
 0x5c1   :  { %2567 = dma.vmem_to_hbm [thread:$0]  %s2562_s23, 512, %s3581_s6, [#allocation4], %s3094_s26, %s3094_s26, %s3095_s27  }
 0x5c2   :  { %3090 = dma.done.wait [#allocation4], 512  }
 0x5c3   :  { %3091 = vsyncadd [#allocation4], 4294966784 }
 0x5c4   :  { %2571 = vsyncpa [#allocation3], 1 }
 0x5c5   :  { %2572 = vsyncpa [#allocation6], 1 }
 0x5c6   :  { %2573 = vsyncpa [#allocation9], 1 }
 0x5c7   :  { %2574 = vsyncpa [#allocation4], 1 }

// kernel: tpu_custom_call.1
= control target key start
LH: loop header
LB: loop body
LE: loop exit
PB: predicated region body
PF: predicated region fallthrough
CT: control target
= control target key end

     0   :  { %11 = vsyncpa [#allocation3], 0  ;;  %s3575_s0 = inlined_call_operand.hbm [shape: f32[32,32], index: 0, kind: input, shape index: {}]   ;;  %s3576_s1 = inlined_call_operand.hbm [shape: f32[32,96], index: 1, kind: input, shape index: {}]   ;;  %s3577_s2 = inlined_call_operand.vmem [shape: f32[1,96], index: 2, kind: input, shape index: {}]   ;;  %s3578_s3 = inlined_call_operand.hbm [shape: f32[8,16,16], index: 3, kind: input, shape index: {}]   ;;  %s3579_s4 = inlined_call_operand.hbm [shape: f32[4,8,32], index: 4, kind: input, shape index: {}]   ;;  %s3580_s5 = inlined_call_operand.vmem [shape: f32[1,32], index: 5, kind: input, shape index: {}]   ;;  %s3581_s6 = inlined_call_operand.hbm [shape: f32[32,32], index: 6, kind: output, shape index: {}]  }
   0x1   :  { %12 = vsyncpa [#allocation6], 0 }
   0x2   :  { %13 = vsyncpa [#allocation9], 0 }
   0x3   :  { %14 = vsyncpa [#allocation4], 0  ;;  %s3092_s21 = smov [#allocation5]   ;;  %s3093_s23 = smov [#allocation2]  }
   0x4   :  { %s32_s22 = sshll.u32 %s3092_s21, 4  ;;  %s20_s24 = sshll.u32 %s3093_s23, 4  ;;  %s33_s22 = int_to_ptr.vmem [resolvable:$true] %s32_s22  ;;  %s21_s24 = int_to_ptr.vmem [resolvable:$true] %s20_s24 }
   0x5   :  { %s2992_s25 = scalar_lea.vmem %s33_s22, 512  ;;  %p2997_p1 = scmp.lt.s32.totalorder %s33_s22, %s33_s22 }
   0x6   :  { %p2993_p0 = scmp.ne.s32.totalorder %s33_s22, %s2992_s25  ;;  %p2998_p2 = scmp.lt.s32.totalorder %s2992_s25, %s2992_s25 }
   0x8   :  { %p2999_p3 = por %p2998_p2, %p2997_p1 }
   0xa   :  { %p3000_p4 = pnand %p2999_p3, %p2993_p0 }
   0xc   :  { %3003 = shalt.err (!%p3000_p4)
}
   0xd   :  { %s3094_s26 = smov 128   ;;  %s3095_s27 = smov 8  }
   0xe   :  { %38 = dma.hbm_to_vmem [thread:$0]  %s3576_s1, 512, %s33_s22, [#allocation6], %s3094_s26, %s3094_s26, %s3095_s27  }
   0xf   :  { %s3012_s30 = scalar_lea.vmem %s21_s24, 512  ;;  %p3017_p6 = scmp.lt.s32.totalorder %s21_s24, %s21_s24 }
  0x10   :  { %p3013_p5 = scmp.ne.s32.totalorder %s21_s24, %s3012_s30  ;;  %p3018_p7 = scmp.lt.s32.totalorder %s3012_s30, %s3012_s30 }
  0x12   :  { %p3019_p8 = por %p3018_p7, %p3017_p6 }
  0x14   :  { %p3020_p9 = pnand %p3019_p8, %p3013_p5 }
  0x16   :  { %3023 = shalt.err (!%p3020_p9)
}
  0x17   :  { %26 = dma.hbm_to_vmem [thread:$0]  %s3575_s0, 512, %s21_s24, [#allocation3], %s3094_s26, %s3094_s26, %s3095_s27  }
  0x18   :  { %s3096_s9 = smov [#allocation7]   ;;  %s3097_s11 = smov [#allocation8]  }
  0x19   :  { %s46_s10 = sshll.u32 %s3096_s9, 4  ;;  %s58_s12 = sshll.u32 %s3097_s11, 4  ;;  %s47_s10 = int_to_ptr.vmem [resolvable:$true] %s46_s10  ;;  %s59_s12 = int_to_ptr.vmem [resolvable:$true] %s58_s12 }
  0x1a   :  { %s3032_s1 = scalar_lea.vmem %s47_s10, 2048  ;;  %p3037_p11 = scmp.lt.s32.totalorder %s47_s10, %s47_s10 }
  0x1b   :  { %p3033_p10 = scmp.ne.s32.totalorder %s47_s10, %s3032_s1  ;;  %p3038_p12 = scmp.lt.s32.totalorder %s3032_s1, %s3032_s1 }
  0x1d   :  { %p3039_p13 = por %p3038_p12, %p3037_p11 }
  0x1f   :  { %p3040_p0 = pnand %p3039_p13, %p3033_p10 }
  0x21   :  { %3043 = shalt.err (!%p3040_p0)
}
  0x22   :  { %52 = dma.hbm_to_vmem [thread:$0]  %s3578_s3, 2048, %s47_s10, [#allocation6], %s3094_s26, %s3094_s26, %s3095_s27  }
  0x23   :  { %s3052_s0 = scalar_lea.vmem %s59_s12, 512  ;;  %p3057_p2 = scmp.lt.s32.totalorder %s59_s12, %s59_s12 }
  0x24   :  { %p3053_p1 = scmp.ne.s32.totalorder %s59_s12, %s3052_s0  ;;  %p3058_p3 = scmp.lt.s32.totalorder %s3052_s0, %s3052_s0 }
  0x26   :  { %p3059_p4 = por %p3058_p3, %p3057_p2 }
  0x28   :  { %p3060_p5 = pnand %p3059_p4, %p3053_p1 }
  0x2a   :  { %3063 = shalt.err (!%p3060_p5)
}
  0x2b   :  { %64 = dma.hbm_to_vmem [thread:$0]  %s3579_s4, 512, %s59_s12, [#allocation9], %s3094_s26, %s3094_s26, %s3095_s27  }
  0x2c   :  { %3084 = dma.done.wait [#allocation3], 512  }
  0x2d   :  { %3085 = vsyncadd [#allocation3], 4294966784 }
  0x2e   :  { %3086 = dma.done.wait [#allocation6], 2560  }
  0x2f   :  { %3087 = vsyncadd [#allocation6], 4294964736 }
  0x30   :  { %3088 = dma.done.wait [#allocation9], 512  }
  0x31   :  { %3089 = vsyncadd [#allocation9], 4294966784  ;;  %vm94_vm0 = vcmask 261120   ;;  %v86_v0 = vld [vmem:[#allocation5 + $0x18] sm:$0xff]  ;;  %v85_v1 = vld [vmem:[#allocation5 + $0x10] sm:$0xff]  ;;  %s3098_s17 = smov 112  }
  0x32   :  { %2742 = vmatprep.subr.mxu0 %v86_v0  ;;  %v79_v2 = vld [vmem:[#allocation2] sm:$0xff]  ;;  %v84_v3 = vld [vmem:[#allocation5 + $0x8] sm:$0xff]  ;;  %v81_v6 = vld [vmem:[#allocation2 + $0x10] sm:$0xff]  ;;  %s3099_s18 = smov 120   ;;  %vm268_vm1 = vcmask 64512   ;;  %s3100_s19 = smov 104  }
  0x33   :  { %2743 = vmatpush3.msra.mxu0 %v86_v0  ;;  %2750 = vmatprep.mubr.msk.f32.mxu0 %vm94_vm0, %v79_v2  ;;  %v83_v4 = vld [vmem:[#allocation5] sm:$0xff]  ;;  %v80_v5 = vld [vmem:[#allocation2 + $0x8] sm:$0xff]  ;;  %v82_v7 = vld [vmem:[#allocation2 + $0x18] sm:$0xff]  ;;  %s3102_s20 = smov 64   ;;  %vm977_vm2 = vcmask 130048  }
  0x34   :  { %2744 = vmatprep.subr.mxu0 %v85_v1  ;;  %v2575_v8 = vld [vmem:[%s3577_s2] ss:$0 sm:$0xff]  ;;  %s3101_s2 = smov 96  }
  0x35   :  { %2745 = vmatpush3.msra.mxu0 %v85_v1 }
  0x36   :  { %2746 = vmatprep.subr.mxu0 %v84_v3 }
  0x37   :  { %2747 = vmatpush3.msra.mxu0 %v84_v3 }
  0x38   :  { %2748 = vmatprep.subr.mxu0 %v83_v4 }
  0x39   :  { %2749 = vmatpush3.msra.mxu0 %v83_v4 }
  0x3a   :  { %2751 = vmatmul.mubr.msk.f32.vlgmr.msra.gmra.mxu0 %vm94_vm0, %v80_v5  ;;  %v249_v5 = vld [vmem:[#allocation7 + $0x8] sm:$0xff] }
  0x3b   :  { %2753 = vmatprep.mubr.msk.f32.mxu0 %vm94_vm0, %v81_v6 }
  0x3e   :  { %2754 = vmatmul.mubr.msk.f32.gmra.mxu0 %vm94_vm0, %v82_v7  ;;  %v248_v7 = vld [vmem:[#allocation7] sm:$0xff] }
  0xfa   :  { %v2752_v9 = vpop.f32.mrf.mxu0 }
  0xfb   :  { %v3170_v10 = vadd.f32 %v2752_v9, %v2575_v8 }
  0xfc   :  { %v173_v11 = vpop.f32.mrf.mxu0 }
  0xfd   :  { %v174_v12 = vadd.f32 %v2575_v8, %v173_v11  ;;  %202 = vrot.lane.b32.xlu1 %v3170_v10, %s3098_s17  ;;  %196 = vrot.lane.b32.xlu0 %v3170_v10, %s3099_s18  ;;  %v233_v33 = vmul.f32 0.35355338, %v3170_v10 }
  0xfe   :  { %v2755_v13 = vpop.f32.mrf.mxu0 }
  0xff   :  { %v232_v14 = vmul.f32 0.35355338, %v174_v12  ;;  %v3176_v16 = vadd.f32 %v2755_v13, %v2575_v8  ;;  %v251_v13 = vld [vmem:[#allocation7 + $0x18] sm:$0xff] }
 0x100   :  { %v183_v15 = vpop.f32.mrf.mxu0 }
 0x101   :  { %208 = vrot.lane.b32.xlu1 %v3170_v10, %s3100_s19  ;;  %194 = vrot.lane.b32.xlu0 %v174_v12, %s3099_s18  ;;  %v3178_v17 = vadd.f32 %v2575_v8, %v183_v15  ;;  %v241_v52 = vmul.f32 0.35355338, %v3176_v16 }
 0x102   :  { %2760 = vmatprep.mubr.msk.f32.mxu1 %vm268_vm1, %v232_v14 }
 0x103   :  { %v240_v45 = vmul.f32 0.35355338, %v3178_v17 }
 0x105   :  { %206 = vrot.lane.b32.xlu1 %v174_v12, %s3100_s19  ;;  %200 = vrot.lane.b32.xlu0 %v174_v12, %s3098_s17 }
 0x109   :  { %214 = vrot.lane.b32.xlu1 %v3178_v17, %s3099_s18  ;;  %216 = vrot.lane.b32.xlu0 %v3176_v16, %s3099_s18 }
 0x10d   :  { %228 = vrot.lane.b32.xlu1 %v3176_v16, %s3100_s19  ;;  %222 = vrot.lane.b32.xlu0 %v3176_v16, %s3098_s17 }
 0x111   :  { %226 = vrot.lane.b32.xlu1 %v3178_v17, %s3100_s19  ;;  %220 = vrot.lane.b32.xlu0 %v3178_v17, %s3098_s17 }
 0x115   :  { %266 = vrot.lane.b32.xlu0 %v3170_v10, %s3101_s2 }
 0x119   :  { %264 = vrot.lane.b32.xlu0 %v174_v12, %s3101_s2 }
 0x16f   :  { %v3189_v18 = vpop.permute.xlu1 %202  ;;  %v197_v19 = vpop.permute.xlu0 %196 }
 0x170   :  { %356 = vrot.lane.b32.xlu1 %v197_v19, %s3101_s2  ;;  %445 = vrot.lane.b32.xlu0 %v3189_v18, %s3101_s2  ;;  %v235_v38 = vmul.f32 0.35355338, %v197_v19  ;;  %v237_v42 = vmul.f32 0.35355338, %v3189_v18 }
 0x173   :  { %v3194_v20 = vpop.permute.xlu1 %208  ;;  %v195_v21 = vpop.permute.xlu0 %194 }
 0x174   :  { %v234_v22 = vmul.f32 0.35355338, %v195_v21  ;;  %354 = vrot.lane.b32.xlu1 %v195_v21, %s3101_s2  ;;  %v239_v46 = vmul.f32 0.35355338, %v3194_v20 }
 0x176   :  { %2767 = vmatprep.mubr.msk.f32.mxu0 %vm268_vm1, %v234_v22 }
 0x177   :  { %v201_v23 = vpop.permute.xlu0 %200  ;;  %v207_v24 = vpop.permute.xlu1 %206 }
 0x178   :  { %534 = vrot.lane.b32.xlu1 %v3194_v20, %s3101_s2  ;;  %443 = vrot.lane.b32.xlu0 %v201_v23, %s3101_s2  ;;  %v236_v34 = vmul.f32 0.35355338, %v201_v23  ;;  %v238_v41 = vmul.f32 0.35355338, %v207_v24 }
 0x17b   :  { %v3201_v25 = vpop.permute.xlu0 %216  ;;  %v3206_v26 = vpop.permute.xlu1 %214 }
 0x17c   :  { %532 = vrot.lane.b32.xlu1 %v207_v24, %s3101_s2  ;;  %623 = vrot.lane.b32.xlu0 %v3176_v16, %s3101_s2  ;;  %v242_v49 = vmul.f32 0.35355338, %v3206_v26  ;;  %v243_v54 = vmul.f32 0.35355338, %v3201_v25 }
 0x17f   :  { %v3208_v27 = vpop.permute.xlu0 %222  ;;  %v3220_v29 = vpop.permute.xlu1 %228 }
 0x180   :  { %621 = vrot.lane.b32.xlu0 %v3178_v17, %s3101_s2  ;;  %712 = vrot.lane.b32.xlu1 %v3201_v25, %s3101_s2  ;;  %v245_v58 = vmul.f32 0.35355338, %v3208_v27  ;;  %v247_v61 = vmul.f32 0.35355338, %v3220_v29 }
 0x183   :  { %v3214_v28 = vpop.permute.xlu0 %220  ;;  %v3228_v31 = vpop.permute.xlu1 %226 }
 0x184   :  { %710 = vrot.lane.b32.xlu1 %v3206_v26, %s3101_s2  ;;  %801 = vrot.lane.b32.xlu0 %v3208_v27, %s3101_s2  ;;  %v244_v53 = vmul.f32 0.35355338, %v3214_v28  ;;  %v246_v57 = vmul.f32 0.35355338, %v3228_v31 }
 0x187   :  { %v267_v30 = vpop.permute.xlu0 %266 }
 0x188   :  { %890 = vrot.lane.b32.xlu1 %v3220_v29, %s3101_s2  ;;  %799 = vrot.lane.b32.xlu0 %v3214_v28, %s3101_s2 }
 0x189   :  { %2756 = vmatprep.subr.msk.mxu1 %vm268_vm1, %v267_v30 }
 0x18a   :  { %2757 = vmatpush3.xpose.msk.msra.mxu1 %vm268_vm1, %v267_v30 }
 0x18b   :  { %v265_v32 = vpop.permute.xlu0 %264 }
 0x18c   :  { %888 = vrot.lane.b32.xlu1 %v3228_v31, %s3101_s2  ;;  %1154 = vrot.lane.b32.xlu0 %v174_v12, %s3102_s20 }
 0x18d   :  { %2758 = vmatprep.subr.msk.mxu1 %vm268_vm1, %v265_v32 }
 0x18e   :  { %2759 = vmatpush3.xpose.msk.msra.mxu1 %vm268_vm1, %v265_v32 }
 0x190   :  { %1156 = vrot.lane.b32.xlu1 %v3170_v10, %s3102_s20  ;;  %1330 = vrot.lane.b32.xlu0 %v3189_v18, %s3102_s20 }
 0x191   :  { %2761 = vmatmul.mubr.msk.f32.vlgmr.msra.gmra.mxu1 %vm268_vm1, %v233_v33  ;;  %v255_v33 = vld [vmem:[#allocation7 + $0x38] sm:$0xff] }
 0x192   :  { %2774 = vmatprep.mubr.msk.f32.mxu1 %vm268_vm1, %v236_v34 }
 0x194   :  { %1243 = vrot.lane.b32.xlu1 %v197_v19, %s3102_s20  ;;  %1417 = vrot.lane.b32.xlu0 %v3194_v20, %s3102_s20  ;;  %v250_v19 = vld [vmem:[#allocation7 + $0x10] sm:$0xff] }
 0x198   :  { %1241 = vrot.lane.b32.xlu1 %v195_v21, %s3102_s20  ;;  %1504 = vrot.lane.b32.xlu0 %v3176_v16, %s3102_s20  ;;  %v253_v16 = vld [vmem:[#allocation7 + $0x28] sm:$0xff]  ;;  %v252_v21 = vld [vmem:[#allocation7 + $0x20] sm:$0xff] }
 0x19c   :  { %1328 = vrot.lane.b32.xlu1 %v201_v23, %s3102_s20 }
 0x1a0   :  { %1415 = vrot.lane.b32.xlu1 %v207_v24, %s3102_s20 }
 0x1a4   :  { %1502 = vrot.lane.b32.xlu1 %v3178_v17, %s3102_s20 }
 0x1e2   :  { %v357_v35 = vpop.permute.xlu1 %356  ;;  %v446_v36 = vpop.permute.xlu0 %445 }
 0x1e3   :  { %2763 = vmatprep.subr.msk.mxu0 %vm268_vm1, %v357_v35  ;;  %2770 = vmatprep.subr.msk.mxu1 %vm268_vm1, %v446_v36 }
 0x1e4   :  { %2764 = vmatpush3.xpose.msk.msra.mxu0 %vm268_vm1, %v357_v35  ;;  %2771 = vmatpush3.xpose.msk.msra.mxu1 %vm268_vm1, %v446_v36  ;;  %v254_v35 = vld [vmem:[#allocation7 + $0x30] sm:$0xff] }
 0x1e6   :  { %v355_v37 = vpop.permute.xlu1 %354 }
 0x1e7   :  { %2765 = vmatprep.subr.msk.mxu0 %vm268_vm1, %v355_v37 }
 0x1e8   :  { %2766 = vmatpush3.xpose.msk.msra.mxu0 %vm268_vm1, %v355_v37 }
 0x1ea   :  { %v535_v39 = vpop.permute.xlu1 %534  ;;  %v444_v40 = vpop.permute.xlu0 %443 }
 0x1eb   :  { %2768 = vmatmul.mubr.msk.f32.vlgmr.msra.gmra.mxu0 %vm268_vm1, %v235_v38  ;;  %2772 = vmatprep.subr.msk.mxu1 %vm268_vm1, %v444_v40 }
 0x1ec   :  { %2777 = vmatprep.subr.msk.mxu0 %vm268_vm1, %v535_v39  ;;  %2773 = vmatpush3.xpose.msk.msra.mxu1 %vm268_vm1, %v444_v40 }
 0x1ed   :  { %2778 = vmatpush3.xpose.msk.msra.mxu0 %vm268_vm1, %v535_v39  ;;  %2781 = vmatprep.mubr.msk.f32.mxu0 %vm268_vm1, %v238_v41  ;;  %v257_v41 = vld [vmem:[#allocation7 + $0x48] sm:$0xff] }
 0x1ee   :  { %v533_v43 = vpop.permute.xlu1 %532  ;;  %v624_v44 = vpop.permute.xlu0 %623 }
 0x1ef   :  { %2775 = vmatmul.mubr.msk.f32.vlgmr.msra.gmra.mxu1 %vm268_vm1, %v237_v42  ;;  %2779 = vmatprep.subr.msk.mxu0 %vm268_vm1, %v533_v43 }
 0x1f0   :  { %2784 = vmatprep.subr.msk.mxu1 %vm268_vm1, %v624_v44  ;;  %2788 = vmatprep.mubr.msk.f32.mxu1 %vm268_vm1, %v240_v45 }
 0x1f1   :  { %2780 = vmatpush3.xpose.msk.msra.mxu0 %vm268_vm1, %v533_v43  ;;  %2785 = vmatpush3.xpose.msk.msra.mxu1 %vm268_vm1, %v624_v44  ;;  %v256_v43 = vld [vmem:[#allocation7 + $0x40] sm:$0xff] }
 0x1f2   :  { %v713_v47 = vpop.permute.xlu1 %712  ;;  %v622_v48 = vpop.permute.xlu0 %621 }
 0x1f3   :  { %2786 = vmatprep.subr.msk.mxu1 %vm268_vm1, %v622_v48  ;;  %2791 = vmatprep.subr.msk.mxu0 %vm268_vm1, %v713_v47 }
 0x1f4   :  { %2782 = vmatmul.mubr.msk.f32.vlgmr.msra.gmra.mxu0 %vm268_vm1, %v239_v46 }
 0x1f5   :  { %2787 = vmatpush3.xpose.msk.msra.mxu1 %vm268_vm1, %v622_v48  ;;  %2792 = vmatpush3.xpose.msk.msra.mxu0 %vm268_vm1, %v713_v47 }
 0x1f6   :  { %2795 = vmatprep.mubr.msk.f32.mxu0 %vm268_vm1, %v242_v49  ;;  %v711_v50 = vpop.permute.xlu1 %710  ;;  %v802_v51 = vpop.permute.xlu0 %801  ;;  %v259_v49 = vld [vmem:[#allocation7 + $0x58] sm:$0xff] }
 0x1f7   :  { %2793 = vmatprep.subr.msk.mxu0 %vm268_vm1, %v711_v50  ;;  %2798 = vmatprep.subr.msk.mxu1 %vm268_vm1, %v802_v51 }
 0x1f8   :  { %2789 = vmatmul.mubr.msk.f32.vlgmr.msra.gmra.mxu1 %vm268_vm1, %v241_v52 }
 0x1f9   :  { %2794 = vmatpush3.xpose.msk.msra.mxu0 %vm268_vm1, %v711_v50  ;;  %2799 = vmatpush3.xpose.msk.msra.mxu1 %vm268_vm1, %v802_v51  ;;  %v258_v51 = vld [vmem:[#allocation7 + $0x50] sm:$0xff] }
 0x1fa   :  { %2802 = vmatprep.mubr.msk.f32.mxu1 %vm268_vm1, %v244_v53  ;;  %v891_v55 = vpop.permute.xlu1 %890  ;;  %v800_v56 = vpop.permute.xlu0 %799 }
 0x1fb   :  { %2800 = vmatprep.subr.msk.mxu1 %vm268_vm1, %v800_v56  ;;  %2805 = vmatprep.subr.msk.mxu0 %vm268_vm1, %v891_v55 }
 0x1fc   :  { %2796 = vmatmul.mubr.msk.f32.vlgmr.msra.gmra.mxu0 %vm268_vm1, %v243_v54 }
 0x1fd   :  { %2801 = vmatpush3.xpose.msk.msra.mxu1 %vm268_vm1, %v800_v56  ;;  %2806 = vmatpush3.xpose.msk.msra.mxu0 %vm268_vm1, %v891_v55 }
 0x1fe   :  { %2809 = vmatprep.mubr.msk.f32.mxu0 %vm268_vm1, %v246_v57  ;;  %v889_v59 = vpop.permute.xlu1 %888  ;;  %v1155_v60 = vpop.permute.xlu0 %1154  ;;  %v261_v57 = vld [vmem:[#allocation7 + $0x68] sm:$0xff] }
 0x1ff   :  { %2807 = vmatprep.subr.msk.mxu0 %vm268_vm1, %v889_v59 }
 0x200   :  { %2803 = vmatmul.mubr.msk.f32.vlgmr.msra.gmra.mxu1 %vm268_vm1, %v245_v58 }
 0x201   :  { %2808 = vmatpush3.xpose.msk.msra.mxu0 %vm268_vm1, %v889_v59  ;;  %v260_v59 = vld [vmem:[#allocation7 + $0x60] sm:$0xff] }
 0x202   :  { %v1157_v62 = vpop.permute.xlu1 %1156  ;;  %v1331_v63 = vpop.permute.xlu0 %1330 }
 0x203   :  { %2812 = vmatprep.subr.mxu1 %v1157_v62  ;;  %2826 = vmatprep.subr.mxu0 %v1331_v63 }
 0x204   :  { %2810 = vmatmul.mubr.msk.f32.vlgmr.msra.gmra.mxu0 %vm268_vm1, %v247_v61  ;;  %2813 = vmatpush3.msra.mxu1 %v1157_v62 }
 0x205   :  { %2827 = vmatpush3.msra.mxu0 %v1331_v63  ;;  %2814 = vmatprep.subr.mxu1 %v1155_v60 }
 0x206   :  { %v3302_v0 = vpop.permute.xlu1 %1243  ;;  %2815 = vmatpush3.msra.mxu1 %v1155_v60  ;;  %v3305_v1 = vpop.permute.xlu0 %1417 }
 0x207   :  { %2819 = vmatprep.subr.mxu1 %v3302_v0 }
 0x20a   :  { %v3307_v2 = vpop.permute.xlu1 %1241  ;;  %v3309_v4 = vpop.permute.xlu0 %1504 }
 0x20e   :  { %v1329_v3 = vpop.permute.xlu1 %1328 }
 0x20f   :  { %2828 = vmatprep.subr.mxu0 %v1329_v3 }
 0x210   :  { %2829 = vmatpush3.msra.mxu0 %v1329_v3 }
 0x211   :  { %2840 = vmatprep.subr.mxu0 %v3309_v4 }
 0x251   :  { %v2762_v6 = vpop.f32.mrf.mxu1 }
 0x252   :  { %v3312_v8 = vadd.f32 %v2762_v6, %v249_v5  ;;  %v263_v5 = vld [vmem:[#allocation7 + $0x78] sm:$0xff] }
 0x253   :  { %v345_v9 = vpop.f32.mrf.mxu1 }
 0x254   :  { %v3314_v10 = vadd.f32 %v345_v9, %v248_v7  ;;  %v981_v11 = vsel %vm977_vm2, %v3312_v8, -inf }
 0x255   :  { %982 = vmax.xlane.f32.xlu1 %v981_v11 }
 0x256   :  { %v978_v12 = vsel %vm977_vm2, %v3314_v10, -inf }
 0x257   :  { %979 = vmax.xlane.f32.xlu0 %v978_v12 }
 0x2ab   :  { %v2769_v14 = vpop.f32.mrf.mxu0 }
 0x2ac   :  { %v3320_v15 = vadd.f32 %v2769_v14, %v251_v13  ;;  %v3374_v13 = vpop.permute.xlu1 %1415 }
 0x2ad   :  { %v434_v18 = vpop.f32.mrf.mxu0 }
 0x2ae   :  { %v987_v17 = vsel %vm977_vm2, %v3320_v15, -inf  ;;  %v3326_v24 = vadd.f32 %v434_v18, %v250_v19 }
 0x2af   :  { %v2776_v20 = vpop.f32.mrf.mxu1  ;;  %988 = vmax.xlane.f32.xlu0 %v987_v17 }
 0x2b0   :  { %v3324_v22 = vadd.f32 %v2776_v20, %v253_v16  ;;  %v984_v39 = vsel %vm977_vm2, %v3326_v24, -inf  ;;  %v3378_v14 = vpop.permute.xlu1 %1502  ;;  %v262_v20 = vld [vmem:[#allocation7 + $0x70] sm:$0xff] }
 0x2b1   :  { %v523_v23 = vpop.f32.mrf.mxu1 }
 0x2b2   :  { %v3328_v30 = vadd.f32 %v523_v23, %v252_v21  ;;  %v993_v32 = vsel %vm977_vm2, %v3324_v22, -inf }
 0x2b3   :  { %994 = vmax.xlane.f32.xlu0 %v993_v32 }
 0x2b4   :  { %v2783_v34 = vpop.f32.mrf.mxu0  ;;  %v990_v36 = vsel %vm977_vm2, %v3328_v30, -inf }
 0x2b5   :  { %991 = vmax.xlane.f32.xlu1 %v990_v36  ;;  %v3334_v37 = vadd.f32 %v2783_v34, %v255_v33 }
 0x2b6   :  { %v612_v38 = vpop.f32.mrf.mxu0 }
 0x2b7   :  { %v3338_v40 = vadd.f32 %v612_v38, %v254_v35  ;;  %985 = vmax.xlane.f32.xlu0 %v984_v39  ;;  %v999_v47 = vsel %vm977_vm2, %v3334_v37, -inf }
 0x2b8   :  { %v2790_v42 = vpop.f32.mrf.mxu1 }
 0x2b9   :  { %v996_v44 = vsel %vm977_vm2, %v3338_v40, -inf  ;;  %v3342_v45 = vadd.f32 %v2790_v42, %v257_v41 }
 0x2ba   :  { %v701_v46 = vpop.f32.mrf.mxu1  ;;  %997 = vmax.xlane.f32.xlu1 %v996_v44 }
 0x2bb   :  { %v3346_v48 = vadd.f32 %v701_v46, %v256_v43  ;;  %1000 = vmax.xlane.f32.xlu0 %v999_v47  ;;  %v1005_v55 = vsel %vm977_vm2, %v3342_v45, -inf }
 0x2bc   :  { %v2797_v50 = vpop.f32.mrf.mxu0 }
 0x2bd   :  { %v1002_v52 = vsel %vm977_vm2, %v3346_v48, -inf  ;;  %v3350_v53 = vadd.f32 %v2797_v50, %v259_v49 }
 0x2be   :  { %v790_v54 = vpop.f32.mrf.mxu0  ;;  %1003 = vmax.xlane.f32.xlu1 %v1002_v52 }
 0x2bf   :  { %v3354_v56 = vadd.f32 %v790_v54, %v258_v51  ;;  %1006 = vmax.xlane.f32.xlu0 %v1005_v55  ;;  %v1011_v63 = vsel %vm977_vm2, %v3350_v53, -inf }
 0x2c0   :  { %v2804_v58 = vpop.f32.mrf.mxu1 }
 0x2c1   :  { %v1008_v60 = vsel %vm977_vm2, %v3354_v56, -inf  ;;  %v3358_v61 = vadd.f32 %v2804_v58, %v261_v57 }
 0x2c2   :  { %v879_v62 = vpop.f32.mrf.mxu1  ;;  %1009 = vmax.xlane.f32.xlu1 %v1008_v60 }
 0x2c3   :  { %v3362_v3 = vadd.f32 %v879_v62, %v260_v59  ;;  %1012 = vmax.xlane.f32.xlu0 %v1011_v63  ;;  %v1017_v11 = vsel %vm977_vm2, %v3358_v61, -inf }
 0x2c4   :  { %v2811_v6 = vpop.f32.mrf.mxu0 }
 0x2c5   :  { %v1014_v7 = vsel %vm977_vm2, %v3362_v3, -inf  ;;  %v3366_v9 = vadd.f32 %v2811_v6, %v263_v5 }
 0x2c6   :  { %1015 = vmax.xlane.f32.xlu1 %v1014_v7  ;;  %v968_v19 = vpop.f32.mrf.mxu0 }
 0x2c7   :  { %1018 = vmax.xlane.f32.xlu0 %v1017_v11  ;;  %v1023_v12 = vsel %vm977_vm2, %v3366_v9, -inf  ;;  %v3383_v21 = vadd.f32 %v968_v19, %v262_v20 }
 0x2cb   :  { %1024 = vmax.xlane.f32.xlu0 %v1023_v12 }
 0x2d7   :  { %1589 = vrot.lane.b32.xlu1 %v3206_v26, %s3102_s20  ;;  %v1020_v26 = vsel %vm977_vm2, %v3383_v21, -inf }
 0x2de   :  { %v983_v16 = vpop.xlane.xlu1 %982 }
 0x2df   :  { %v1027_v17 = vsub.f32 %v3312_v8, %v983_v16 }
 0x2e1   :  { %1591 = vrot.lane.b32.xlu0 %v3201_v25, %s3102_s20  ;;  %v1044_v18 = vmul.f32 1.442695, %v1027_v17 }
 0x2e3   :  { %2920 = vpow2.f32 %v1044_v18 }
 0x2e5   :  { %1678 = vrot.lane.b32.xlu0 %v3208_v27, %s3102_s20  ;;  %v980_v27 = vpop.xlane.xlu0 %979 }
 0x2e6   :  { %v1026_v8 = vsub.f32 %v3314_v10, %v980_v27 }
 0x2e8   :  { %v1042_v32 = vmul.f32 1.442695, %v1026_v8 }
 0x2ea   :  { %2922 = vpow2.f32 %v1042_v32 }
 0x2f0   :  { %v3387_v23 = vpop.eup %2920 }
 0x2f1   :  { %v1077_v25 = vsel %vm977_vm2, %v3387_v23, 0.0 }
 0x2f7   :  { %v3394_v33 = vpop.eup %2922 }
 0x2f8   :  { %v1074_v34 = vsel %vm977_vm2, %v3394_v33, 0.0 }
 0x2fb   :  { %1021 = vmax.xlane.f32.xlu1 %v1020_v26 }
 0x304   :  { %1078 = vadd.xlane.f32.xlu0 %v1077_v25 }
 0x30c   :  { %1676 = vrot.lane.b32.xlu1 %v3214_v28, %s3102_s20 }
 0x330   :  { %1075 = vadd.xlane.f32.xlu1 %v1074_v34 }
 0x338   :  { %v989_v35 = vpop.xlane.xlu0 %988 }
 0x339   :  { %v1029_v36 = vsub.f32 %v3320_v15, %v989_v35 }
 0x33b   :  { %v1048_v38 = vmul.f32 1.442695, %v1029_v36 }
 0x33c   :  { %v995_v39 = vpop.xlane.xlu0 %994 }
 0x33d   :  { %2924 = vpow2.f32 %v1048_v38  ;;  %v1031_v41 = vsub.f32 %v3324_v22, %v995_v39 }
 0x33e   :  { %v992_v28 = vpop.xlane.xlu1 %991 }
 0x33f   :  { %v1052_v42 = vmul.f32 1.442695, %v1031_v41  ;;  %v1030_v10 = vsub.f32 %v3328_v30, %v992_v28 }
 0x340   :  { %v986_v43 = vpop.xlane.xlu0 %985 }
 0x341   :  { %2926 = vpow2.f32 %v1052_v42  ;;  %v1028_v44 = vsub.f32 %v3326_v24, %v986_v43  ;;  %v1050_v46 = vmul.f32 1.442695, %v1030_v10 }
 0x343   :  { %v1046_v47 = vmul.f32 1.442695, %v1028_v44  ;;  %v998_v49 = vpop.xlane.xlu1 %997 }
 0x344   :  { %v1032_v50 = vsub.f32 %v3338_v40, %v998_v49  ;;  %v1001_v51 = vpop.xlane.xlu0 %1000 }
 0x345   :  { %2928 = vpow2.f32 %v1046_v47  ;;  %v1033_v15 = vsub.f32 %v3334_v37, %v1001_v51 }
 0x346   :  { %2930 = vpow2.f32 %v1050_v46  ;;  %v1054_v52 = vmul.f32 1.442695, %v1032_v50 }
 0x347   :  { %v1056_v22 = vmul.f32 1.442695, %v1033_v15  ;;  %v1004_v54 = vpop.xlane.xlu1 %1003 }
 0x348   :  { %v1034_v55 = vsub.f32 %v3346_v48, %v1004_v54  ;;  %v1007_v30 = vpop.xlane.xlu0 %1006 }
 0x349   :  { %2932 = vpow2.f32 %v1056_v22  ;;  %v1035_v57 = vsub.f32 %v3342_v45, %v1007_v30 }
 0x34a   :  { %v3406_v24 = vpop.eup %2924  ;;  %2934 = vpow2.f32 %v1054_v52  ;;  %v1058_v58 = vmul.f32 1.442695, %v1034_v55 }
 0x34b   :  { %v1060_v59 = vmul.f32 1.442695, %v1035_v57  ;;  %v1010_v40 = vpop.xlane.xlu1 %1009  ;;  %v1083_v60 = vsel %vm977_vm2, %v3406_v24, 0.0 }
 0x34c   :  { %v1036_v37 = vsub.f32 %v3354_v56, %v1010_v40  ;;  %1084 = vadd.xlane.f32.xlu0 %v1083_v60  ;;  %v1013_v62 = vpop.xlane.xlu0 %1012 }
 0x34d   :  { %2936 = vpow2.f32 %v1060_v59  ;;  %v1037_v48 = vsub.f32 %v3350_v53, %v1013_v62 }
 0x34e   :  { %v3412_v63 = vpop.eup %2926  ;;  %2938 = vpow2.f32 %v1058_v58  ;;  %v1062_v45 = vmul.f32 1.442695, %v1036_v37 }
 0x34f   :  { %v1064_v5 = vmul.f32 1.442695, %v1037_v48  ;;  %v1016_v6 = vpop.xlane.xlu1 %1015  ;;  %v1089_v7 = vsel %vm977_vm2, %v3412_v63, 0.0 }
 0x350   :  { %v1038_v11 = vsub.f32 %v3362_v3, %v1016_v6  ;;  %1090 = vadd.xlane.f32.xlu0 %v1089_v7  ;;  %v1019_v12 = vpop.xlane.xlu0 %1018 }
 0x351   :  { %2940 = vpow2.f32 %v1064_v5  ;;  %v1039_v56 = vsub.f32 %v3358_v61, %v1019_v12 }
 0x352   :  { %v3418_v16 = vpop.eup %2928  ;;  %2942 = vpow2.f32 %v1062_v45  ;;  %v1066_v53 = vmul.f32 1.442695, %v1038_v11 }
 0x353   :  { %v1068_v17 = vmul.f32 1.442695, %v1039_v56  ;;  %v1080_v18 = vsel %vm977_vm2, %v3418_v16, 0.0  ;;  %v3422_v19 = vpop.eup %2930  ;;  %v3465_v49 = vpop.permute.xlu1 %1589 }
 0x354   :  { %1081 = vadd.xlane.f32.xlu1 %v1080_v18  ;;  %v1025_v20 = vpop.xlane.xlu0 %1024  ;;  %v1086_v61 = vsel %vm977_vm2, %v3422_v19, 0.0 }
 0x355   :  { %2944 = vpow2.f32 %v1068_v17  ;;  %v1041_v3 = vsub.f32 %v3366_v9, %v1025_v20 }
 0x356   :  { %v3425_v26 = vpop.eup %2932  ;;  %2946 = vpow2.f32 %v1066_v53 }
 0x357   :  { %v1072_v25 = vmul.f32 1.442695, %v1041_v3  ;;  %v1095_v27 = vsel %vm977_vm2, %v3425_v26, 0.0  ;;  %v3431_v8 = vpop.eup %2934 }
 0x358   :  { %1087 = vadd.xlane.f32.xlu1 %v1086_v61  ;;  %1096 = vadd.xlane.f32.xlu0 %v1095_v27  ;;  %v1092_v9 = vsel %vm977_vm2, %v3431_v8, 0.0  ;;  %v3474_v54 = vpop.permute.xlu0 %1591 }
 0x359   :  { %2948 = vpow2.f32 %v1072_v25 }
 0x35a   :  { %v3433_v32 = vpop.eup %2936 }
 0x35b   :  { %v1101_v34 = vsel %vm977_vm2, %v3433_v32, 0.0  ;;  %v3439_v35 = vpop.eup %2938 }
 0x35c   :  { %1093 = vadd.xlane.f32.xlu1 %v1092_v9  ;;  %1102 = vadd.xlane.f32.xlu0 %v1101_v34  ;;  %v1098_v38 = vsel %vm977_vm2, %v3439_v35, 0.0  ;;  %v3476_v55 = vpop.permute.xlu0 %1678 }
 0x35e   :  { %v3441_v36 = vpop.eup %2940 }
 0x35f   :  { %v1107_v39 = vsel %vm977_vm2, %v3441_v36, 0.0  ;;  %v3447_v41 = vpop.eup %2942 }
 0x360   :  { %1099 = vadd.xlane.f32.xlu1 %v1098_v38  ;;  %1108 = vadd.xlane.f32.xlu0 %v1107_v39  ;;  %v1104_v42 = vsel %vm977_vm2, %v3447_v41, 0.0  ;;  %v1850_v38 = vld [vmem:[#allocation8] sm:$0xff] }
 0x362   :  { %v3449_v28 = vpop.eup %2944 }
 0x363   :  { %v1113_v10 = vsel %vm977_vm2, %v3449_v28, 0.0  ;;  %v3455_v43 = vpop.eup %2946 }
 0x364   :  { %1105 = vadd.xlane.f32.xlu1 %v1104_v42  ;;  %1114 = vadd.xlane.f32.xlu0 %v1113_v10  ;;  %v1110_v46 = vsel %vm977_vm2, %v3455_v43, 0.0 }
 0x366   :  { %v3457_v44 = vpop.eup %2948 }
 0x367   :  { %v1119_v47 = vsel %vm977_vm2, %v3457_v44, 0.0 }
 0x368   :  { %1111 = vadd.xlane.f32.xlu1 %v1110_v46  ;;  %1120 = vadd.xlane.f32.xlu0 %v1119_v47  ;;  %v1852_v46 = vld [vmem:[#allocation8 + $0x10] sm:$0xff]  ;;  %v1853_v47 = vld [vmem:[#allocation8 + $0x18] sm:$0xff] }
 0x37e   :  { %1765 = vrot.lane.b32.xlu0 %v3220_v29, %s3102_s20 }
 0x384   :  { %v1022_v50 = vpop.xlane.xlu1 %1021 }
 0x385   :  { %v1040_v51 = vsub.f32 %v3383_v21, %v1022_v50 }
 0x387   :  { %v1070_v15 = vmul.f32 1.442695, %v1040_v51 }
 0x388   :  { %v3478_v29 = vpop.permute.xlu1 %1676 }
 0x389   :  { %2950 = vpow2.f32 %v1070_v15 }
 0x38d   :  { %v1079_v30 = vpop.xlane.xlu0 %1078 }
 0x38e   :  { %2952 = vrcp.f32 %v1079_v30 }
 0x396   :  { %v3468_v52 = vpop.eup %2950 }
 0x397   :  { %v1116_v22 = vsel %vm977_vm2, %v3468_v52, 0.0 }
 0x398   :  { %1117 = vadd.xlane.f32.xlu1 %v1116_v22 }
 0x39b   :  { %v2953_v57 = vpop.eup %2952 }
 0x39c   :  { %v1139_v40 = vmul.f32 %v2953_v57, %v3387_v23 }
 0x3a9   :  { %1763 = vrot.lane.b32.xlu1 %v3228_v31, %s3102_s20 }
 0x3b9   :  { %v1076_v21 = vpop.xlane.xlu1 %1075 }
 0x3ba   :  { %2954 = vrcp.f32 %v1076_v21 }
 0x3c7   :  { %v2955_v58 = vpop.eup %2954 }
 0x3c8   :  { %v1138_v59 = vmul.f32 %v2955_v58, %v3394_v33 }
 0x3ca   :  { %2816 = vmatprep.mubr.msk.f32.mxu1 %vm977_vm2, %v1138_v59 }
 0x3cb   :  { %2817 = vmatmul.mubr.msk.f32.vlgmr.msra.gmra.mxu1 %vm977_vm2, %v1139_v40 }
 0x3cc   :  { %2820 = vmatpush3.msra.mxu1 %v3302_v0 }
 0x3cd   :  { %2821 = vmatprep.subr.mxu1 %v3307_v2 }
 0x3ce   :  { %2822 = vmatpush3.msra.mxu1 %v3307_v2 }
 0x3cf   :  { %2833 = vmatprep.subr.mxu1 %v3305_v1 }
 0x3d5   :  { %v1085_v31 = vpop.xlane.xlu0 %1084 }
 0x3d6   :  { %2956 = vrcp.f32 %v1085_v31 }
 0x3d9   :  { %v1091_v60 = vpop.xlane.xlu0 %1090 }
 0x3dd   :  { %v1082_v37 = vpop.xlane.xlu1 %1081 }
 0x3de   :  { %2958 = vrcp.f32 %v1082_v37 }
 0x3df   :  { %2960 = vrcp.f32 %v1091_v60 }
 0x3e1   :  { %v1088_v33 = vpop.xlane.xlu1 %1087  ;;  %v1097_v23 = vpop.xlane.xlu0 %1096 }
 0x3e2   :  { %2962 = vrcp.f32 %v1088_v33 }
 0x3e3   :  { %2964 = vrcp.f32 %v1097_v23  ;;  %v2957_v5 = vpop.eup %2956 }
 0x3e4   :  { %v1141_v11 = vmul.f32 %v2957_v5, %v3406_v24 }
 0x3e5   :  { %v1094_v62 = vpop.xlane.xlu1 %1093  ;;  %v1103_v48 = vpop.xlane.xlu0 %1102 }
 0x3e6   :  { %2966 = vrcp.f32 %v1094_v62 }
 0x3e7   :  { %2968 = vrcp.f32 %v1103_v48 }
 0x3e9   :  { %v1100_v0 = vpop.xlane.xlu1 %1099  ;;  %v1109_v45 = vpop.xlane.xlu0 %1108 }
 0x3ea   :  { %2970 = vrcp.f32 %v1100_v0 }
 0x3eb   :  { %v2959_v2 = vpop.eup %2958  ;;  %2972 = vrcp.f32 %v1109_v45 }
 0x3ec   :  { %v1140_v6 = vmul.f32 %v2959_v2, %v3418_v16  ;;  %v2961_v12 = vpop.eup %2960 }
 0x3ed   :  { %v1106_v7 = vpop.xlane.xlu1 %1105  ;;  %v1115_v56 = vpop.xlane.xlu0 %1114  ;;  %v1143_v18 = vmul.f32 %v2961_v12, %v3412_v63 }
 0x3ee   :  { %2974 = vrcp.f32 %v1106_v7  ;;  %2823 = vmatprep.mubr.msk.f32.mxu1 %vm977_vm2, %v1140_v6 }
 0x3ef   :  { %v2963_v53 = vpop.eup %2962  ;;  %2824 = vmatmul.mubr.msk.f32.vlgmr.msra.gmra.mxu1 %vm977_vm2, %v1141_v11  ;;  %2976 = vrcp.f32 %v1115_v56 }
 0x3f0   :  { %2834 = vmatpush3.msra.mxu1 %v3305_v1  ;;  %v1142_v17 = vmul.f32 %v2963_v53, %v3422_v19  ;;  %v2965_v20 = vpop.eup %2964 }
 0x3f1   :  { %2835 = vmatprep.subr.mxu1 %v3374_v13  ;;  %v1112_v16 = vpop.xlane.xlu1 %1111  ;;  %v1121_v1 = vpop.xlane.xlu0 %1120  ;;  %v1145_v63 = vmul.f32 %v2965_v20, %v3425_v26 }
 0x3f2   :  { %2978 = vrcp.f32 %v1112_v16  ;;  %2836 = vmatpush3.msra.mxu1 %v3374_v13  ;;  %2830 = vmatprep.mubr.msk.f32.mxu0 %vm977_vm2, %v1142_v17  ;;  %v2636_v17 = vld [vmem:[%s3580_s5] ss:$0 sm:$0xff]  ;;  %s3103_s5 = smov [#allocation10]  }
 0x3f3   :  { %v2967_v24 = vpop.eup %2966  ;;  %2847 = vmatprep.subr.mxu1 %v3474_v54  ;;  %2831 = vmatmul.mubr.msk.f32.vlgmr.msra.gmra.mxu0 %vm977_vm2, %v1143_v18  ;;  %2980 = vrcp.f32 %v1121_v1  ;;  %s2561_s23 = sshll.u32 %s3103_s5, 4  ;;  %s2562_s23 = int_to_ptr.vmem [resolvable:$true] %s2561_s23 }
 0x3f4   :  { %2841 = vmatpush3.msra.mxu0 %v3309_v4  ;;  %v1144_v19 = vmul.f32 %v2967_v24, %v3431_v8  ;;  %v2969_v3 = vpop.eup %2968  ;;  %s3064_s24 = scalar_lea.vmem %s2562_s23, 512  ;;  %p3069_p7 = scmp.lt.s32.totalorder %s2562_s23, %s2562_s23 }
 0x3f5   :  { %2842 = vmatprep.subr.mxu0 %v3378_v14  ;;  %v1147_v25 = vmul.f32 %v2969_v3, %v3433_v32  ;;  %v1766_v26 = vpop.permute.xlu0 %1765  ;;  %p3065_p6 = scmp.ne.s32.totalorder %s2562_s23, %s3064_s24  ;;  %p3070_p8 = scmp.lt.s32.totalorder %s3064_s24, %s3064_s24 }
 0x3f6   :  { %2843 = vmatpush3.msra.mxu0 %v3378_v14  ;;  %2837 = vmatprep.mubr.msk.f32.mxu1 %vm977_vm2, %v1144_v19 }
 0x3f7   :  { %v2971_v13 = vpop.eup %2970  ;;  %2854 = vmatprep.subr.mxu0 %v3476_v55  ;;  %2838 = vmatmul.mubr.msk.f32.vlgmr.msra.gmra.mxu1 %vm977_vm2, %v1145_v63  ;;  %p3071_p9 = por %p3070_p8, %p3069_p7 }
 0x3f8   :  { %2848 = vmatpush3.msra.mxu1 %v3474_v54  ;;  %v1146_v4 = vmul.f32 %v2971_v13, %v3439_v35  ;;  %v2973_v61 = vpop.eup %2972 }
 0x3f9   :  { %2849 = vmatprep.subr.mxu1 %v3465_v49  ;;  %v1149_v8 = vmul.f32 %v2973_v61, %v3441_v36  ;;  %p3072_p10 = pnand %p3071_p9, %p3065_p6 }
 0x3fa   :  { %2850 = vmatpush3.msra.mxu1 %v3465_v49  ;;  %2844 = vmatprep.mubr.msk.f32.mxu0 %vm977_vm2, %v1146_v4 }
 0x3fb   :  { %v2975_v14 = vpop.eup %2974  ;;  %2861 = vmatprep.subr.mxu1 %v1766_v26  ;;  %2845 = vmatmul.mubr.msk.f32.vlgmr.msra.gmra.mxu0 %vm977_vm2, %v1147_v25 }
 0x3fc   :  { %2855 = vmatpush3.msra.mxu0 %v3476_v55  ;;  %v1148_v27 = vmul.f32 %v2975_v14, %v3447_v41  ;;  %v2977_v9 = vpop.eup %2976 }
 0x3fd   :  { %2856 = vmatprep.subr.mxu0 %v3478_v29  ;;  %v1151_v35 = vmul.f32 %v2977_v9, %v3449_v28  ;;  %v1851_v28 = vld [vmem:[#allocation8 + $0x8] sm:$0xff] }
 0x3fe   :  { %2857 = vmatpush3.msra.mxu0 %v3478_v29  ;;  %2851 = vmatprep.mubr.msk.f32.mxu1 %vm977_vm2, %v1148_v27 }
 0x3ff   :  { %v2979_v32 = vpop.eup %2978  ;;  %2852 = vmatmul.mubr.msk.f32.vlgmr.msra.gmra.mxu1 %vm977_vm2, %v1149_v8  ;;  %2868 = vmatprep.subr.mxu0 %v1850_v38 }
 0x400   :  { %2862 = vmatpush3.msra.mxu1 %v1766_v26  ;;  %v1150_v34 = vmul.f32 %v2979_v32, %v3455_v43  ;;  %v2981_v41 = vpop.eup %2980 }
 0x401   :  { %v1153_v43 = vmul.f32 %v2981_v41, %v3457_v44 }
 0x402   :  { %2858 = vmatprep.mubr.msk.f32.mxu0 %vm977_vm2, %v1150_v34 }
 0x403   :  { %2859 = vmatmul.mubr.msk.f32.vlgmr.msra.gmra.mxu0 %vm977_vm2, %v1151_v35 }
 0x404   :  { %2869 = vmatpush3.msra.mxu0 %v1850_v38 }
 0x405   :  { %2878 = vmatprep.subr.mxu0 %v1852_v46 }
 0x421   :  { %v1118_v36 = vpop.xlane.xlu1 %1117 }
 0x422   :  { %2982 = vrcp.f32 %v1118_v36 }
 0x425   :  { %v1764_v39 = vpop.permute.xlu1 %1763 }
 0x426   :  { %2863 = vmatprep.subr.mxu1 %v1764_v39 }
 0x427   :  { %2864 = vmatpush3.msra.mxu1 %v1764_v39 }
 0x428   :  { %2873 = vmatprep.subr.mxu1 %v1851_v28 }
 0x42f   :  { %v2983_v42 = vpop.eup %2982 }
 0x430   :  { %v1152_v10 = vmul.f32 %v2983_v42, %v3468_v52 }
 0x432   :  { %2865 = vmatprep.mubr.msk.f32.mxu1 %vm977_vm2, %v1152_v10 }
 0x433   :  { %2866 = vmatmul.mubr.msk.f32.vlgmr.msra.gmra.mxu1 %vm977_vm2, %v1153_v43 }
 0x434   :  { %2874 = vmatpush3.msra.mxu1 %v1851_v28 }
 0x435   :  { %2883 = vmatprep.subr.mxu1 %v1853_v47 }
 0x48b   :  { %v2818_v49 = vpop.f32.mrf.mxu1 }
 0x48d   :  { %v1232_v50 = vpop.f32.mrf.mxu1 }
 0x48e   :  { %2870 = vmatprep.mubr.msk.f32.mxu0 %vm268_vm1, %v1232_v50 }
 0x48f   :  { %2871 = vmatmul.mubr.msk.f32.vlgmr.msra.gmra.mxu0 %vm268_vm1, %v2818_v49 }
 0x490   :  { %2879 = vmatpush3.msra.mxu0 %v1852_v46 }
 0x491   :  { %2888 = vmatprep.subr.mxu0 %v1850_v38 }
 0x4af   :  { %v2825_v44 = vpop.f32.mrf.mxu1 }
 0x4b1   :  { %v1319_v51 = vpop.f32.mrf.mxu1 }
 0x4b2   :  { %2875 = vmatprep.mubr.msk.f32.mxu1 %vm268_vm1, %v1319_v51 }
 0x4b3   :  { %v2832_v15 = vpop.f32.mrf.mxu0  ;;  %2876 = vmatmul.mubr.msk.f32.vlgmr.msra.gmra.mxu1 %vm268_vm1, %v2825_v44 }
 0x4b4   :  { %2884 = vmatpush3.msra.mxu1 %v1853_v47 }
 0x4b5   :  { %v1406_v52 = vpop.f32.mrf.mxu0  ;;  %2893 = vmatprep.subr.mxu1 %v1851_v28 }
 0x4b6   :  { %2880 = vmatprep.mubr.msk.f32.mxu0 %vm268_vm1, %v1406_v52 }
 0x4b7   :  { %v2839_v22 = vpop.f32.mrf.mxu1  ;;  %2881 = vmatmul.mubr.msk.f32.vlgmr.msra.gmra.mxu0 %vm268_vm1, %v2832_v15 }
 0x4b8   :  { %2889 = vmatpush3.msra.mxu0 %v1850_v38 }
 0x4b9   :  { %v1493_v54 = vpop.f32.mrf.mxu1  ;;  %2898 = vmatprep.subr.mxu0 %v1852_v46 }
 0x4ba   :  { %2885 = vmatprep.mubr.msk.f32.mxu1 %vm268_vm1, %v1493_v54 }
 0x4bb   :  { %v2846_v55 = vpop.f32.mrf.mxu0  ;;  %2886 = vmatmul.mubr.msk.f32.vlgmr.msra.gmra.mxu1 %vm268_vm1, %v2839_v22 }
 0x4bc   :  { %2894 = vmatpush3.msra.mxu1 %v1851_v28 }
 0x4bd   :  { %v1580_v29 = vpop.f32.mrf.mxu0  ;;  %2903 = vmatprep.subr.mxu1 %v1853_v47 }
 0x4be   :  { %2890 = vmatprep.mubr.msk.f32.mxu0 %vm268_vm1, %v1580_v29 }
 0x4bf   :  { %v2853_v30 = vpop.f32.mrf.mxu1  ;;  %2891 = vmatmul.mubr.msk.f32.vlgmr.msra.gmra.mxu0 %vm268_vm1, %v2846_v55 }
 0x4c0   :  { %2899 = vmatpush3.msra.mxu0 %v1852_v46 }
 0x4c1   :  { %v1667_v21 = vpop.f32.mrf.mxu1 }
 0x4c2   :  { %2895 = vmatprep.mubr.msk.f32.mxu1 %vm268_vm1, %v1667_v21 }
 0x4c3   :  { %v2860_v57 = vpop.f32.mrf.mxu0  ;;  %2896 = vmatmul.mubr.msk.f32.vlgmr.msra.gmra.mxu1 %vm268_vm1, %v2853_v30 }
 0x4c4   :  { %2904 = vmatpush3.msra.mxu1 %v1853_v47 }
 0x4c5   :  { %v1754_v58 = vpop.f32.mrf.mxu0 }
 0x4c6   :  { %2900 = vmatprep.mubr.msk.f32.mxu0 %vm268_vm1, %v1754_v58 }
 0x4c7   :  { %2901 = vmatmul.mubr.msk.f32.vlgmr.msra.gmra.mxu0 %vm268_vm1, %v2860_v57 }
 0x4f3   :  { %v2867_v59 = vpop.f32.mrf.mxu1 }
 0x4f5   :  { %v1841_v40 = vpop.f32.mrf.mxu1 }
 0x4f6   :  { %2905 = vmatprep.mubr.msk.f32.mxu1 %vm268_vm1, %v1841_v40 }
 0x4f7   :  { %2906 = vmatmul.mubr.msk.f32.vlgmr.msra.gmra.mxu1 %vm268_vm1, %v2867_v59 }
 0x54f   :  { %v2872_v31 = vpop.f32.mrf.mxu0 }
 0x550   :  { %v2185_v48 = vsel %vm94_vm0, %v2872_v31, 0.0 }
 0x551   :  { %v1926_v37 = vpop.f32.mrf.mxu0 }
 0x552   :  { %v2178_v6 = vsel %vm94_vm0, %v1926_v37, 0.0 }
 0x573   :  { %v2877_v60 = vpop.f32.mrf.mxu1 }
 0x574   :  { %v2186_v23 = vsel %vm94_vm0, %v2877_v60, 0.0 }
 0x575   :  { %v2007_v33 = vpop.f32.mrf.mxu1  ;;  %v2187_v5 = vadd.f32 %v2186_v23, %v2185_v48 }
 0x576   :  { %v2179_v0 = vsel %vm94_vm0, %v2007_v33, 0.0 }
 0x577   :  { %v2882_v62 = vpop.f32.mrf.mxu0  ;;  %v2180_v11 = vadd.f32 %v2179_v0, %v2178_v6 }
 0x578   :  { %v2188_v45 = vsel %vm94_vm0, %v2882_v62, 0.0 }
 0x579   :  { %v2088_v2 = vpop.f32.mrf.mxu0  ;;  %v2189_v12 = vadd.f32 %v2188_v45, %v2187_v5 }
 0x57a   :  { %v2181_v7 = vsel %vm94_vm0, %v2088_v2, 0.0 }
 0x57b   :  { %v2887_v56 = vpop.f32.mrf.mxu1  ;;  %v2182_v16 = vadd.f32 %v2181_v7, %v2180_v11 }
 0x57c   :  { %v2190_v53 = vsel %vm94_vm0, %v2887_v56, 0.0 }
 0x57d   :  { %v2191_v18 = vadd.f32 %v2190_v53, %v2189_v12  ;;  %v2169_v20 = vpop.f32.mrf.mxu1 }
 0x57e   :  { %v2183_v24 = vsel %vm94_vm0, %v2169_v20, 0.0 }
 0x57f   :  { %v2200_v1 = vadd.f32 %v2636_v17, %v2191_v18  ;;  %v2184_v19 = vadd.f32 %v2183_v24, %v2182_v16  ;;  %v2892_v3 = vpop.f32.mrf.mxu0 }
 0x580   :  { %v2538_v27 = vsel %vm94_vm0, %v2892_v3, 0.0 }
 0x581   :  { %2202 = vst.msk [vmem:[#allocation10 + $0x8] sm:$0xff] %vm94_vm0, %v2200_v1  ;;  %v2199_v63 = vadd.f32 %v2636_v17, %v2184_v19  ;;  %v2279_v13 = vpop.f32.mrf.mxu0 }
 0x582   :  { %v2531_v34 = vsel %vm94_vm0, %v2279_v13, 0.0 }
 0x583   :  { %2201 = vst.msk [vmem:[#allocation10] sm:$0xff] %vm94_vm0, %v2199_v63  ;;  %v2897_v4 = vpop.f32.mrf.mxu1 }
 0x584   :  { %v2539_v26 = vsel %vm94_vm0, %v2897_v4, 0.0 }
 0x585   :  { %v2360_v61 = vpop.f32.mrf.mxu1  ;;  %v2540_v32 = vadd.f32 %v2539_v26, %v2538_v27 }
 0x586   :  { %v2532_v8 = vsel %vm94_vm0, %v2360_v61, 0.0 }
 0x587   :  { %v2902_v25 = vpop.f32.mrf.mxu0  ;;  %v2533_v38 = vadd.f32 %v2532_v8, %v2531_v34 }
 0x588   :  { %v2541_v9 = vsel %vm94_vm0, %v2902_v25, 0.0 }
 0x589   :  { %v2441_v14 = vpop.f32.mrf.mxu0  ;;  %v2542_v36 = vadd.f32 %v2541_v9, %v2540_v32 }
 0x58a   :  { %v2534_v35 = vsel %vm94_vm0, %v2441_v14, 0.0 }
 0x58b   :  { %v2535_v42 = vadd.f32 %v2534_v35, %v2533_v38 }
 0x5b7   :  { %v2907_v39 = vpop.f32.mrf.mxu1 }
 0x5b8   :  { %v2543_v41 = vsel %vm94_vm0, %v2907_v39, 0.0 }
 0x5b9   :  { %v2544_v10 = vadd.f32 %v2543_v41, %v2542_v36  ;;  %v2522_v43 = vpop.f32.mrf.mxu1 }
 0x5ba   :  { %v2536_v28 = vsel %vm94_vm0, %v2522_v43, 0.0 }
 0x5bb   :  { %v2553_v46 = vadd.f32 %v2636_v17, %v2544_v10  ;;  %v2537_v47 = vadd.f32 %v2536_v28, %v2535_v42 }
 0x5bd   :  { %2555 = vst.msk [vmem:[#allocation10 + $0x18] sm:$0xff] %vm94_vm0, %v2553_v46  ;;  %v2552_v49 = vadd.f32 %v2636_v17, %v2537_v47 }
 0x5bf   :  { %2554 = vst.msk [vmem:[#allocation10 + $0x10] sm:$0xff] %vm94_vm0, %v2552_v49 }
 0x5c0   :  { %3075 = shalt.err (!%p3072_p10)
}
 0x5c1   :  { %2567 = dma.vmem_to_hbm [thread:$0]  %s2562_s23, 512, %s3581_s6, [#allocation4], %s3094_s26, %s3094_s26, %s3095_s27  }
 0x5c2   :  { %3090 = dma.done.wait [#allocation4], 512  }
 0x5c3   :  { %3091 = vsyncadd [#allocation4], 4294966784 }
 0x5c4   :  { %2571 = vsyncpa [#allocation3], 1 }
 0x5c5   :  { %2572 = vsyncpa [#allocation6], 1 }
 0x5c6   :  { %2573 = vsyncpa [#allocation9], 1 }
 0x5c7   :  { %2574 = vsyncpa [#allocation4], 1 }

</bundles_post_ra>
